<compile_context>
chip_gen: v5e
topology: v5e:2x2
jax: 0.10.0
libtpu: 0.0.40
codegen_flags: <defaults>
</compile_context>

<pallas_src>
import jax
import jax.numpy as jnp
from jax import lax
from jax.experimental import pallas as pl
from jax.experimental.pallas import tpu as pltpu

NUM_NET = 5
F_XD, F_EDGE = 62, 10          # num_features_xd, num_features_edge
OUT_DIM, OUT_DIM2 = 64, 16
FC1_OUT = 64


# ------------------------------------------------------------ Pallas kernels
def _net_branch_kernel(x1_ref, x2_ref, adj1_ref, adj2_ref, m1_ref, m2_ref,
                       gw1_ref, gb1_ref, gw2_ref, gb2_ref,
                       fw1_ref, fb1_ref, fw2_ref, fb2_ref,
                       o1_ref, o2_ref):
    """Fused per-net body (one grid step == one of the 5 nets).

    For each branch:  x -> GCN+ReLU -> GCN+ReLU -> GCN -> [cat with x_in]
                      -> global_max_pool -> Linear -> ReLU
    The cat is folded into the Linear by splitting its weight into the x_in
    part (fw[0]) and the GCN-output part (fw[1]).
    """

    def gcn_stack(x_in, adj, gw_ref, gb_ref):
        h = x_in
        for layer in range(3):                           # static unroll
            w = gw_ref[0, layer]                         # (F, F)
            b = gb_ref[0, layer]                         # (1, F)
            xw = jnp.dot(h, w, preferred_element_type=jnp.float32)
            h = jnp.dot(adj, xw, preferred_element_type=jnp.float32) + b
            if layer < 2:
                h = jnp.maximum(h, 0.0)
        return h

    def masked_max_pool(h, m_ref):
        # m_ref: (N, B) one-hot graph membership; 2-D where/max per graph
        # (no (B,N,F) 3-D broadcast).
        neg = jnp.float32(-1e30)
        rows = []
        for b in range(m_ref.shape[1]):                  # B is tiny & static
            col = m_ref[:, pl.ds(b, 1)]                  # (N, 1)
            rows.append(jnp.max(jnp.where(col > 0.5, h, neg),
                                axis=0, keepdims=True))  # (1, F)
        return jnp.concatenate(rows, axis=0)             # (B, F)

    def branch(x_ref, adj_ref, m_ref, gw_ref, gb_ref, fw_ref, fb_ref, o_ref):
        x_in = x_ref[0]                                  # (N, F)
        adj = adj_ref[...]                               # (N, N)
        h = gcn_stack(x_in, adj, gw_ref, gb_ref)         # (N, F)
        p_in = masked_max_pool(x_in, m_ref)              # (B, F)
        p_h = masked_max_pool(h, m_ref)                  # (B, F)
        g = (jnp.dot(p_in, fw_ref[0, 0], preferred_element_type=jnp.float32)
             + jnp.dot(p_h, fw_ref[0, 1], preferred_element_type=jnp.float32)
             + fb_ref[0])
        o_ref[0] = jnp.maximum(g, 0.0)                   # dropout = identity (eval)

    branch(x1_ref, adj1_ref, m1_ref, gw1_ref, gb1_ref, fw1_ref, fb1_ref, o1_ref)
    branch(x2_ref, adj2_ref, m2_ref, gw2_ref, gb2_ref, fw2_ref, fb2_ref, o2_ref)


def _fc1_kernel(h1_ref, h2_ref, w1_ref, w2_ref, b_ref, o_ref):
    """fc1 over the implicit cat([x11, x22], 1):
       xc = sum_i h1[i] @ W1[i] + sum_i h2[i] @ W2[i] + b   (no concat buffer)."""
    acc = jnp.zeros(o_ref.shape, jnp.float32)
    for i in range(h1_ref.shape[0]):                     # static unroll over nets
        acc = acc + jnp.dot(h1_ref[i], w1_ref[i],
                            preferred_element_type=jnp.float32)
        acc = acc + jnp.dot(h2_ref[i], w2_ref[i],
                            preferred_element_type=jnp.float32)
    o_ref[...] = acc + b_ref[...]


# ----------------------------------------------------------- Pallas wrappers
def gcnnet_forward(params, x1, x2, adj1, adj2, mask1T, mask2T):
    """GCNNet forward; 2 pallas_calls total (per-net fused body + fc1 tail)."""
    num_net, n1, f1 = x1.shape
    _, n2, f2 = x2.shape
    batch = mask1T.shape[1]
    out_dim = params["fw1"].shape[-1]
    out_dim2 = params["fw2"].shape[-1]
    fc1_out = params["fc1_b"].shape[-1]

    # TODO(synk): if each of the 5 nets carries a distinct graph
    # (edge_index/batch), stack adj/mask per net and switch their index_maps
    # to lambda i: (i, 0, 0); here they are shared and kept VMEM-resident.
    h1_all, h2_all = pl.pallas_call(
        _net_branch_kernel,
        out_shape=(jax.ShapeDtypeStruct((num_net, batch, out_dim), jnp.float32),
                   jax.ShapeDtypeStruct((num_net, batch, out_dim2), jnp.float32)),
        grid=(num_net,),
        in_specs=[
            pl.BlockSpec((1, n1, f1), lambda i: (i, 0, 0)),              # x1
            pl.BlockSpec((1, n2, f2), lambda i: (i, 0, 0)),              # x2
            pl.BlockSpec((n1, n1), lambda i: (0, 0)),                    # adj1 (resident)
            pl.BlockSpec((n2, n2), lambda i: (0, 0)),                    # adj2 (resident)
            pl.BlockSpec((n1, batch), lambda i: (0, 0)),                 # mask1T (resident)
            pl.BlockSpec((n2, batch), lambda i: (0, 0)),                 # mask2T (resident)
            pl.BlockSpec((1, 3, f1, f1), lambda i: (i, 0, 0, 0)),        # gw1
            pl.BlockSpec((1, 3, 1, f1), lambda i: (i, 0, 0, 0)),         # gb1
            pl.BlockSpec((1, 3, f2, f2), lambda i: (i, 0, 0, 0)),        # gw2
            pl.BlockSpec((1, 3, 1, f2), lambda i: (i, 0, 0, 0)),         # gb2
            pl.BlockSpec((1, 2, f1, out_dim), lambda i: (i, 0, 0, 0)),   # fw1 (split)
            pl.BlockSpec((1, 1, out_dim), lambda i: (i, 0, 0)),          # fb1
            pl.BlockSpec((1, 2, f2, out_dim2), lambda i: (i, 0, 0, 0)),  # fw2 (split)
            pl.BlockSpec((1, 1, out_dim2), lambda i: (i, 0, 0)),         # fb2
        ],
        out_specs=(pl.BlockSpec((1, batch, out_dim), lambda i: (i, 0, 0)),
                   pl.BlockSpec((1, batch, out_dim2), lambda i: (i, 0, 0))),
        compiler_params=pltpu.CompilerParams(
            dimension_semantics=("parallel",)),                          # v7x megacore
    )(x1, x2, adj1, adj2, mask1T, mask2T,
      params["gw1"], params["gb1"], params["gw2"], params["gb2"],
      params["fw1"], params["fb1"], params["fw2"], params["fb2"])

    xc = pl.pallas_call(
        _fc1_kernel,
        out_shape=jax.ShapeDtypeStruct((batch, fc1_out), jnp.float32),
        grid=(1,),
        in_specs=[
            pl.BlockSpec(h1_all.shape, lambda i: (0, 0, 0)),
            pl.BlockSpec(h2_all.shape, lambda i: (0, 0, 0)),
            pl.BlockSpec(params["fc1_w1"].shape, lambda i: (0, 0, 0)),
            pl.BlockSpec(params["fc1_w2"].shape, lambda i: (0, 0, 0)),
            pl.BlockSpec(params["fc1_b"].shape, lambda i: (0, 0)),
        ],
        out_specs=pl.BlockSpec((batch, fc1_out), lambda i: (0, 0)),
    )(h1_all, h2_all, params["fc1_w1"], params["fc1_w2"], params["fc1_b"])
    return xc


# ------------------------------------------------------------------ JAX glue
def build_norm_adj(edge_index, num_nodes):
    """Dense A_hat = D^-1/2 (A + I) D^-1/2 from edge_index (PyG gcn_norm)."""
    src, dst = edge_index[0], edge_index[1]
    a = jnp.zeros((num_nodes, num_nodes), jnp.float32).at[dst, src].add(1.0)
    a = a + jnp.eye(num_nodes, dtype=jnp.float32)      # add self-loops
    deg = jnp.sum(a, axis=1)
    dinv = jnp.where(deg > 0, 1.0 / jnp.sqrt(deg), 0.0)
    return dinv[:, None] * a * dinv[None, :]


def ring_edge_index(nodes_per_graph, n_graphs):
    src, dst = [], []
    for g in range(n_graphs):
        base = g * nodes_per_graph
        for k in range(nodes_per_graph):
            a = base + k
            b = base + (k + 1) % nodes_per_graph
            src += [a, b]
            dst += [b, a]
    return jnp.array([src, dst], dtype=jnp.int32)


def init_packed_params(key):
    """Per-net parameters stacked along a leading (NUM_NET, ...) axis.

    fw1/fw2 are the fc_g1/fc_g2 weights of shape (2F, out) pre-split into
    ([x_in half], [gcn-output half]); fc1_w1/fc1_w2 are the fc1 weight
    (400, 64) pre-split/reshaped into per-net (64,64) / (16,16->64) blocks.
    Same math as the unsplit torch layers.
    """
    ks = jax.random.split(key, 11)

    def w(k, shape, scale=0.1):
        return jax.random.normal(k, shape, jnp.float32) * scale

    return {
        "gw1": w(ks[0], (NUM_NET, 3, F_XD, F_XD)),
        "gb1": w(ks[1], (NUM_NET, 3, 1, F_XD)),
        "gw2": w(ks[2], (NUM_NET, 3, F_EDGE, F_EDGE)),
        "gb2": w(ks[3], (NUM_NET, 3, 1, F_EDGE)),
        "fw1": w(ks[4], (NUM_NET, 2, F_XD, OUT_DIM)),
        "fb1": w(ks[5], (NUM_NET, 1, OUT_DIM)),
        "fw2": w(ks[6], (NUM_NET, 2, F_EDGE, OUT_DIM2)),
        "fb2": w(ks[7], (NUM_NET, 1, OUT_DIM2)),
        "fc1_w1": w(ks[8], (NUM_NET, OUT_DIM, FC1_OUT)),
        "fc1_w2": w(ks[9], (NUM_NET, OUT_DIM2, FC1_OUT)),
        "fc1_b": w(ks[10], (1, FC1_OUT)),
    }
    # TODO(synk): drug*_gcn4/5, fc2, `out`, sigmoid and dropout RNG exist in
    # __init__ but are never exercised by forward(); not materialized.


def gcnnet_reference(params, x1, x2, adj1, adj2, mask1T, mask2T):
    """Pure-JAX replica of the literal torch forward (cat + single Linear)."""
    hp = lax.Precision.HIGHEST

    def gcn(adj, x, w, b, relu):
        h = jnp.dot(adj, jnp.dot(x, w, precision=hp), precision=hp) + b
        return jnp.maximum(h, 0.0) if relu else h

    def gmp(x, maskT):
        neg = jnp.float32(-1e30)
        return jnp.max(jnp.where(maskT.T[:, :, None] > 0.5, x[None], neg), axis=1)

    outs1, outs2 = [], []
    for i in range(x1.shape[0]):
        h = gcn(adj1, x1[i], params["gw1"][i, 0], params["gb1"][i, 0], True)
        h = gcn(adj1, h, params["gw1"][i, 1], params["gb1"][i, 1], True)
        h = gcn(adj1, h, params["gw1"][i, 2], params["gb1"][i, 2], False)
        cat1 = jnp.concatenate([x1[i], h], axis=1)
        w_cat1 = jnp.concatenate([params["fw1"][i, 0], params["fw1"][i, 1]], axis=0)
        outs1.append(jnp.maximum(
            jnp.dot(gmp(cat1, mask1T), w_cat1, precision=hp) + params["fb1"][i], 0.0))

        h = gcn(adj2, x2[i], params["gw2"][i, 0], params["gb2"][i, 0], True)
        h = gcn(adj2, h, params["gw2"][i, 1], params["gb2"][i, 1], True)
        h = gcn(adj2, h, params["gw2"][i, 2], params["gb2"][i, 2], False)
        cat2 = jnp.concatenate([x2[i], h], axis=1)
        w_cat2 = jnp.concatenate([params["fw2"][i, 0], params["fw2"][i, 1]], axis=0)
        outs2.append(jnp.maximum(
            jnp.dot(gmp(cat2, mask2T), w_cat2, precision=hp) + params["fb2"][i], 0.0))

    xx = jnp.concatenate(outs1 + outs2, axis=1)                        # (B, 400)
    w_fc1 = jnp.concatenate([params["fc1_w1"].reshape(-1, FC1_OUT),
                             params["fc1_w2"].reshape(-1, FC1_OUT)], axis=0)
    return jnp.dot(xx, w_fc1, precision=hp) + params["fc1_b"]


# ----------------------------------------------------------------------- main
if __name__ == "__main__":
    B = 2                          # graphs per batch
    NODES_PER_GRAPH = 8
    N = B * NODES_PER_GRAPH        # 16 nodes total in each batched graph

    key = jax.random.PRNGKey(0)
    kp, kx1, kx2 = jax.random.split(key, 3)

    params = init_packed_params(kp)

    edge_index = ring_edge_index(NODES_PER_GRAPH, B)
    adj = build_norm_adj(edge_index, N)                                # (16, 16)
    batch_vec = jnp.repeat(jnp.arange(B, dtype=jnp.int32), NODES_PER_GRAPH)
    maskT = (batch_vec[:, None] == jnp.arange(B, dtype=jnp.int32)[None, :]
             ).astype(jnp.float32)                                     # (N, B)

    x1 = jax.random.normal(kx1, (NUM_NET, N, F_XD), jnp.float32)
    x2 = jax.random.normal(kx2, (NUM_NET, N, F_EDGE), jnp.float32)

    fwd = jax.jit(gcnnet_forward)
    xc = jax.block_until_ready(fwd(params, x1, x2, adj, adj, maskT, maskT))
    assert xc.shape == (B, FC1_OUT) and xc.dtype == jnp.float32

    ref = gcnnet_reference(params, x1, x2, adj, adj, maskT, maskT)
    assert jnp.allclose(xc, ref, atol=2e-3, rtol=2e-3), \
        float(jnp.max(jnp.abs(xc - ref)))

    print("KERNEL_OK")
</pallas_src>

<mosaic_0001>
module attributes {stable_mosaic.version = 11 : i64} {
  func.func @_net_branch_kernel(%arg0: i32, %arg1: memref<1x16x62xf32, #tpu.memory_space<vmem>>, %arg2: memref<1x16x10xf32, #tpu.memory_space<vmem>>, %arg3: memref<16x16xf32, #tpu.memory_space<vmem>>, %arg4: memref<16x16xf32, #tpu.memory_space<vmem>>, %arg5: memref<16x2xf32, #tpu.memory_space<vmem>>, %arg6: memref<16x2xf32, #tpu.memory_space<vmem>>, %arg7: memref<1x3x62x62xf32, #tpu.memory_space<vmem>>, %arg8: memref<1x3x1x62xf32, #tpu.memory_space<vmem>>, %arg9: memref<1x3x10x10xf32, #tpu.memory_space<vmem>>, %arg10: memref<1x3x1x10xf32, #tpu.memory_space<vmem>>, %arg11: memref<1x2x62x64xf32, #tpu.memory_space<vmem>>, %arg12: memref<1x1x64xf32, #tpu.memory_space<vmem>>, %arg13: memref<1x2x10x16xf32, #tpu.memory_space<vmem>>, %arg14: memref<1x1x16xf32, #tpu.memory_space<vmem>>, %arg15: memref<1x2x64xf32, #tpu.memory_space<vmem>>, %arg16: memref<1x2x16xf32, #tpu.memory_space<vmem>>) attributes {dimension_semantics = [#tpu.dimension_semantics<parallel>], iteration_bounds = array<i64: 5>, scalar_prefetch = 0 : i64, scratch_operands = 0 : i64, tpu.core_type = #tpu.core_type<tc>, window_params = [{transform_indices = @transform_0, window_bounds = array<i64: 1, 16, 62>}, {transform_indices = @transform_1, window_bounds = array<i64: 1, 16, 10>}, {pipeline_mode = #tpu.pipeline_mode<synchronous>, transform_indices = @transform_2, window_bounds = array<i64: 16, 16>}, {pipeline_mode = #tpu.pipeline_mode<synchronous>, transform_indices = @transform_3, window_bounds = array<i64: 16, 16>}, {pipeline_mode = #tpu.pipeline_mode<synchronous>, transform_indices = @transform_4, window_bounds = array<i64: 16, 2>}, {pipeline_mode = #tpu.pipeline_mode<synchronous>, transform_indices = @transform_5, window_bounds = array<i64: 16, 2>}, {transform_indices = @transform_6, window_bounds = array<i64: 1, 3, 62, 62>}, {transform_indices = @transform_7, window_bounds = array<i64: 1, 3, 1, 62>}, {transform_indices = @transform_8, window_bounds = array<i64: 1, 3, 10, 10>}, {transform_indices = @transform_9, window_bounds = array<i64: 1, 3, 1, 10>}, {transform_indices = @transform_10, window_bounds = array<i64: 1, 2, 62, 64>}, {transform_indices = @transform_11, window_bounds = array<i64: 1, 1, 64>}, {transform_indices = @transform_12, window_bounds = array<i64: 1, 2, 10, 16>}, {transform_indices = @transform_13, window_bounds = array<i64: 1, 1, 16>}, {transform_indices = @transform_14, window_bounds = array<i64: 1, 2, 64>}, {transform_indices = @transform_15, window_bounds = array<i64: 1, 2, 16>}]} {
    %c0 = arith.constant 0 : index
    %c0_0 = arith.constant 0 : index
    %c0_1 = arith.constant 0 : index
    %0 = vector.load %arg1[%c0, %c0_0, %c0_1] : memref<1x16x62xf32, #tpu.memory_space<vmem>>, vector<1x16x62xf32>
    %1 = vector.shape_cast %0 : vector<1x16x62xf32> to vector<16x62xf32>
    %c0_2 = arith.constant 0 : index
    %c0_3 = arith.constant 0 : index
    %2 = vector.load %arg3[%c0_2, %c0_3] : memref<16x16xf32, #tpu.memory_space<vmem>>, vector<16x16xf32>
    %c0_4 = arith.constant 0 : index
    %c0_5 = arith.constant 0 : index
    %c0_6 = arith.constant 0 : index
    %c0_7 = arith.constant 0 : index
    %3 = vector.load %arg7[%c0_4, %c0_5, %c0_6, %c0_7] : memref<1x3x62x62xf32, #tpu.memory_space<vmem>>, vector<1x1x62x62xf32>
    %4 = vector.shape_cast %3 : vector<1x1x62x62xf32> to vector<62x62xf32>
    %c0_8 = arith.constant 0 : index
    %c0_9 = arith.constant 0 : index
    %c0_10 = arith.constant 0 : index
    %c0_11 = arith.constant 0 : index
    %5 = vector.load %arg8[%c0_8, %c0_9, %c0_10, %c0_11] : memref<1x3x1x62xf32, #tpu.memory_space<vmem>>, vector<1x1x1x62xf32>
    %6 = vector.shape_cast %5 : vector<1x1x1x62xf32> to vector<1x62xf32>
    %cst = arith.constant dense<0.000000e+00> : vector<16x62xf32>
    %7 = tpu.matmul %1, %4, %cst {dimension_numbers = #tpu.dot_dimension_numbers<[1], [0], [0], [1], [0, 0, 1, 1], [], []>} : vector<16x62xf32>, vector<62x62xf32>, vector<16x62xf32> -> vector<16x62xf32>
    %cst_12 = arith.constant dense<0.000000e+00> : vector<16x62xf32>
    %8 = tpu.matmul %2, %7, %cst_12 {dimension_numbers = #tpu.dot_dimension_numbers<[1], [0], [0], [1], [0, 0, 1, 1], [], []>} : vector<16x16xf32>, vector<16x62xf32>, vector<16x62xf32> -> vector<16x62xf32>
    %9 = vector.broadcast %6 : vector<1x62xf32> to vector<16x62xf32>
    %10 = arith.addf %8, %9 : vector<16x62xf32>
    %cst_13 = arith.constant 0.000000e+00 : f32
    %11 = vector.broadcast %cst_13 : f32 to vector<16x62xf32>
    %12 = arith.maximumf %10, %11 : vector<16x62xf32>
    %c0_14 = arith.constant 0 : index
    %c1 = arith.constant 1 : index
    %c0_15 = arith.constant 0 : index
    %c0_16 = arith.constant 0 : index
    %13 = vector.load %arg7[%c0_14, %c1, %c0_15, %c0_16] : memref<1x3x62x62xf32, #tpu.memory_space<vmem>>, vector<1x1x62x62xf32>
    %14 = vector.shape_cast %13 : vector<1x1x62x62xf32> to vector<62x62xf32>
    %c0_17 = arith.constant 0 : index
    %c1_18 = arith.constant 1 : index
    %c0_19 = arith.constant 0 : index
    %c0_20 = arith.constant 0 : index
    %15 = vector.load %arg8[%c0_17, %c1_18, %c0_19, %c0_20] : memref<1x3x1x62xf32, #tpu.memory_space<vmem>>, vector<1x1x1x62xf32>
    %16 = vector.shape_cast %15 : vector<1x1x1x62xf32> to vector<1x62xf32>
    %cst_21 = arith.constant dense<0.000000e+00> : vector<16x62xf32>
    %17 = tpu.matmul %12, %14, %cst_21 {dimension_numbers = #tpu.dot_dimension_numbers<[1], [0], [0], [1], [0, 0, 1, 1], [], []>} : vector<16x62xf32>, vector<62x62xf32>, vector<16x62xf32> -> vector<16x62xf32>
    %cst_22 = arith.constant dense<0.000000e+00> : vector<16x62xf32>
    %18 = tpu.matmul %2, %17, %cst_22 {dimension_numbers = #tpu.dot_dimension_numbers<[1], [0], [0], [1], [0, 0, 1, 1], [], []>} : vector<16x16xf32>, vector<16x62xf32>, vector<16x62xf32> -> vector<16x62xf32>
    %19 = vector.broadcast %16 : vector<1x62xf32> to vector<16x62xf32>
    %20 = arith.addf %18, %19 : vector<16x62xf32>
    %cst_23 = arith.constant 0.000000e+00 : f32
    %21 = vector.broadcast %cst_23 : f32 to vector<16x62xf32>
    %22 = arith.maximumf %20, %21 : vector<16x62xf32>
    %c0_24 = arith.constant 0 : index
    %c2 = arith.constant 2 : index
    %c0_25 = arith.constant 0 : index
    %c0_26 = arith.constant 0 : index
    %23 = vector.load %arg7[%c0_24, %c2, %c0_25, %c0_26] : memref<1x3x62x62xf32, #tpu.memory_space<vmem>>, vector<1x1x62x62xf32>
    %24 = vector.shape_cast %23 : vector<1x1x62x62xf32> to vector<62x62xf32>
    %c0_27 = arith.constant 0 : index
    %c2_28 = arith.constant 2 : index
    %c0_29 = arith.constant 0 : index
    %c0_30 = arith.constant 0 : index
    %25 = vector.load %arg8[%c0_27, %c2_28, %c0_29, %c0_30] : memref<1x3x1x62xf32, #tpu.memory_space<vmem>>, vector<1x1x1x62xf32>
    %26 = vector.shape_cast %25 : vector<1x1x1x62xf32> to vector<1x62xf32>
    %cst_31 = arith.constant dense<0.000000e+00> : vector<16x62xf32>
    %27 = tpu.matmul %22, %24, %cst_31 {dimension_numbers = #tpu.dot_dimension_numbers<[1], [0], [0], [1], [0, 0, 1, 1], [], []>} : vector<16x62xf32>, vector<62x62xf32>, vector<16x62xf32> -> vector<16x62xf32>
    %cst_32 = arith.constant dense<0.000000e+00> : vector<16x62xf32>
    %28 = tpu.matmul %2, %27, %cst_32 {dimension_numbers = #tpu.dot_dimension_numbers<[1], [0], [0], [1], [0, 0, 1, 1], [], []>} : vector<16x16xf32>, vector<16x62xf32>, vector<16x62xf32> -> vector<16x62xf32>
    %29 = vector.broadcast %26 : vector<1x62xf32> to vector<16x62xf32>
    %30 = arith.addf %28, %29 : vector<16x62xf32>
    %c0_33 = arith.constant 0 : index
    %c0_34 = arith.constant 0 : index
    %31 = vector.load %arg5[%c0_33, %c0_34] : memref<16x2xf32, #tpu.memory_space<vmem>>, vector<16x1xf32>
    %cst_35 = arith.constant 5.000000e-01 : f32
    %32 = vector.broadcast %cst_35 : f32 to vector<16x1xf32>
    %33 = arith.cmpf ogt, %31, %32 : vector<16x1xf32>
    %cst_36 = arith.constant -1.000000e+30 : f32
    %34 = vector.shape_cast %33 : vector<16x1xi1> to vector<16x1xi1>
    %35 = vector.broadcast %34 : vector<16x1xi1> to vector<16x62xi1>
    %36 = vector.broadcast %cst_36 : f32 to vector<16x62xf32>
    %37 = arith.select %35, %1, %36 : vector<16x62xi1>, vector<16x62xf32>
    %cst_37 = arith.constant dense<0xFF800000> : vector<62xf32>
    %38 = vector.multi_reduction <maximumf>, %37, %cst_37 [0] : vector<16x62xf32> to vector<62xf32>
    %39 = vector.shape_cast %38 : vector<62xf32> to vector<1x62xf32>
    %c0_38 = arith.constant 0 : index
    %c1_39 = arith.constant 1 : index
    %40 = vector.load %arg5[%c0_38, %c1_39] : memref<16x2xf32, #tpu.memory_space<vmem>>, vector<16x1xf32>
    %cst_40 = arith.constant 5.000000e-01 : f32
    %41 = vector.broadcast %cst_40 : f32 to vector<16x1xf32>
    %42 = arith.cmpf ogt, %40, %41 : vector<16x1xf32>
    %cst_41 = arith.constant -1.000000e+30 : f32
    %43 = vector.shape_cast %42 : vector<16x1xi1> to vector<16x1xi1>
    %44 = vector.broadcast %43 : vector<16x1xi1> to vector<16x62xi1>
    %45 = vector.broadcast %cst_41 : f32 to vector<16x62xf32>
    %46 = arith.select %44, %1, %45 : vector<16x62xi1>, vector<16x62xf32>
    %cst_42 = arith.constant dense<0xFF800000> : vector<62xf32>
    %47 = vector.multi_reduction <maximumf>, %46, %cst_42 [0] : vector<16x62xf32> to vector<62xf32>
    %48 = vector.shape_cast %47 : vector<62xf32> to vector<1x62xf32>
    %49 = tpu.concatenate %39, %48 in 0 : vector<1x62xf32>, vector<1x62xf32> -> vector<2x62xf32>
    %c0_43 = arith.constant 0 : index
    %c0_44 = arith.constant 0 : index
    %50 = vector.load %arg5[%c0_43, %c0_44] : memref<16x2xf32, #tpu.memory_space<vmem>>, vector<16x1xf32>
    %cst_45 = arith.constant 5.000000e-01 : f32
    %51 = vector.broadcast %cst_45 : f32 to vector<16x1xf32>
    %52 = arith.cmpf ogt, %50, %51 : vector<16x1xf32>
    %cst_46 = arith.constant -1.000000e+30 : f32
    %53 = vector.shape_cast %52 : vector<16x1xi1> to vector<16x1xi1>
    %54 = vector.broadcast %53 : vector<16x1xi1> to vector<16x62xi1>
    %55 = vector.broadcast %cst_46 : f32 to vector<16x62xf32>
    %56 = arith.select %54, %30, %55 : vector<16x62xi1>, vector<16x62xf32>
    %cst_47 = arith.constant dense<0xFF800000> : vector<62xf32>
    %57 = vector.multi_reduction <maximumf>, %56, %cst_47 [0] : vector<16x62xf32> to vector<62xf32>
    %58 = vector.shape_cast %57 : vector<62xf32> to vector<1x62xf32>
    %c0_48 = arith.constant 0 : index
    %c1_49 = arith.constant 1 : index
    %59 = vector.load %arg5[%c0_48, %c1_49] : memref<16x2xf32, #tpu.memory_space<vmem>>, vector<16x1xf32>
    %cst_50 = arith.constant 5.000000e-01 : f32
    %60 = vector.broadcast %cst_50 : f32 to vector<16x1xf32>
    %61 = arith.cmpf ogt, %59, %60 : vector<16x1xf32>
    %cst_51 = arith.constant -1.000000e+30 : f32
    %62 = vector.shape_cast %61 : vector<16x1xi1> to vector<16x1xi1>
    %63 = vector.broadcast %62 : vector<16x1xi1> to vector<16x62xi1>
    %64 = vector.broadcast %cst_51 : f32 to vector<16x62xf32>
    %65 = arith.select %63, %30, %64 : vector<16x62xi1>, vector<16x62xf32>
    %cst_52 = arith.constant dense<0xFF800000> : vector<62xf32>
    %66 = vector.multi_reduction <maximumf>, %65, %cst_52 [0] : vector<16x62xf32> to vector<62xf32>
    %67 = vector.shape_cast %66 : vector<62xf32> to vector<1x62xf32>
    %68 = tpu.concatenate %58, %67 in 0 : vector<1x62xf32>, vector<1x62xf32> -> vector<2x62xf32>
    %c0_53 = arith.constant 0 : index
    %c0_54 = arith.constant 0 : index
    %c0_55 = arith.constant 0 : index
    %c0_56 = arith.constant 0 : index
    %69 = vector.load %arg11[%c0_53, %c0_54, %c0_55, %c0_56] : memref<1x2x62x64xf32, #tpu.memory_space<vmem>>, vector<1x1x62x64xf32>
    %70 = vector.shape_cast %69 : vector<1x1x62x64xf32> to vector<62x64xf32>
    %cst_57 = arith.constant dense<0.000000e+00> : vector<2x64xf32>
    %71 = tpu.matmul %49, %70, %cst_57 {dimension_numbers = #tpu.dot_dimension_numbers<[1], [0], [0], [1], [0, 0, 1, 1], [], []>} : vector<2x62xf32>, vector<62x64xf32>, vector<2x64xf32> -> vector<2x64xf32>
    %c0_58 = arith.constant 0 : index
    %c1_59 = arith.constant 1 : index
    %c0_60 = arith.constant 0 : index
    %c0_61 = arith.constant 0 : index
    %72 = vector.load %arg11[%c0_58, %c1_59, %c0_60, %c0_61] : memref<1x2x62x64xf32, #tpu.memory_space<vmem>>, vector<1x1x62x64xf32>
    %73 = vector.shape_cast %72 : vector<1x1x62x64xf32> to vector<62x64xf32>
    %cst_62 = arith.constant dense<0.000000e+00> : vector<2x64xf32>
    %74 = tpu.matmul %68, %73, %cst_62 {dimension_numbers = #tpu.dot_dimension_numbers<[1], [0], [0], [1], [0, 0, 1, 1], [], []>} : vector<2x62xf32>, vector<62x64xf32>, vector<2x64xf32> -> vector<2x64xf32>
    %75 = arith.addf %71, %74 : vector<2x64xf32>
    %c0_63 = arith.constant 0 : index
    %c0_64 = arith.constant 0 : index
    %c0_65 = arith.constant 0 : index
    %76 = vector.load %arg12[%c0_63, %c0_64, %c0_65] : memref<1x1x64xf32, #tpu.memory_space<vmem>>, vector<1x1x64xf32>
    %77 = vector.shape_cast %76 : vector<1x1x64xf32> to vector<1x64xf32>
    %78 = vector.broadcast %77 : vector<1x64xf32> to vector<2x64xf32>
    %79 = arith.addf %75, %78 : vector<2x64xf32>
    %cst_66 = arith.constant 0.000000e+00 : f32
    %80 = vector.broadcast %cst_66 : f32 to vector<2x64xf32>
    %81 = arith.maximumf %79, %80 : vector<2x64xf32>
    %c0_67 = arith.constant 0 : index
    %c0_68 = arith.constant 0 : index
    %c0_69 = arith.constant 0 : index
    %82 = vector.load %arg15[%c0_67, %c0_68, %c0_69] : memref<1x2x64xf32, #tpu.memory_space<vmem>>, vector<1x2x64xf32>
    %83 = vector.shape_cast %82 : vector<1x2x64xf32> to vector<2x64xf32>
    %84 = vector.shape_cast %81 : vector<2x64xf32> to vector<1x2x64xf32>
    tpu.vector_store %arg15[%c0_67, %c0_68, %c0_69], %84 {strides = array<i32>} : memref<1x2x64xf32, #tpu.memory_space<vmem>>, vector<1x2x64xf32>,
    %c0_70 = arith.constant 0 : index
    %c0_71 = arith.constant 0 : index
    %c0_72 = arith.constant 0 : index
    %85 = vector.load %arg2[%c0_70, %c0_71, %c0_72] : memref<1x16x10xf32, #tpu.memory_space<vmem>>, vector<1x16x10xf32>
    %86 = vector.shape_cast %85 : vector<1x16x10xf32> to vector<16x10xf32>
    %c0_73 = arith.constant 0 : index
    %c0_74 = arith.constant 0 : index
    %87 = vector.load %arg4[%c0_73, %c0_74] : memref<16x16xf32, #tpu.memory_space<vmem>>, vector<16x16xf32>
    %c0_75 = arith.constant 0 : index
    %c0_76 = arith.constant 0 : index
    %c0_77 = arith.constant 0 : index
    %c0_78 = arith.constant 0 : index
    %88 = vector.load %arg9[%c0_75, %c0_76, %c0_77, %c0_78] : memref<1x3x10x10xf32, #tpu.memory_space<vmem>>, vector<1x1x10x10xf32>
    %89 = vector.shape_cast %88 : vector<1x1x10x10xf32> to vector<10x10xf32>
    %c0_79 = arith.constant 0 : index
    %c0_80 = arith.constant 0 : index
    %c0_81 = arith.constant 0 : index
    %c0_82 = arith.constant 0 : index
    %90 = vector.load %arg10[%c0_79, %c0_80, %c0_81, %c0_82] : memref<1x3x1x10xf32, #tpu.memory_space<vmem>>, vector<1x1x1x10xf32>
    %91 = vector.shape_cast %90 : vector<1x1x1x10xf32> to vector<1x10xf32>
    %cst_83 = arith.constant dense<0.000000e+00> : vector<16x10xf32>
    %92 = tpu.matmul %86, %89, %cst_83 {dimension_numbers = #tpu.dot_dimension_numbers<[1], [0], [0], [1], [0, 0, 1, 1], [], []>} : vector<16x10xf32>, vector<10x10xf32>, vector<16x10xf32> -> vector<16x10xf32>
    %cst_84 = arith.constant dense<0.000000e+00> : vector<16x10xf32>
    %93 = tpu.matmul %87, %92, %cst_84 {dimension_numbers = #tpu.dot_dimension_numbers<[1], [0], [0], [1], [0, 0, 1, 1], [], []>} : vector<16x16xf32>, vector<16x10xf32>, vector<16x10xf32> -> vector<16x10xf32>
    %94 = vector.broadcast %91 : vector<1x10xf32> to vector<16x10xf32>
    %95 = arith.addf %93, %94 : vector<16x10xf32>
    %cst_85 = arith.constant 0.000000e+00 : f32
    %96 = vector.broadcast %cst_85 : f32 to vector<16x10xf32>
    %97 = arith.maximumf %95, %96 : vector<16x10xf32>
    %c0_86 = arith.constant 0 : index
    %c1_87 = arith.constant 1 : index
    %c0_88 = arith.constant 0 : index
    %c0_89 = arith.constant 0 : index
    %98 = vector.load %arg9[%c0_86, %c1_87, %c0_88, %c0_89] : memref<1x3x10x10xf32, #tpu.memory_space<vmem>>, vector<1x1x10x10xf32>
    %99 = vector.shape_cast %98 : vector<1x1x10x10xf32> to vector<10x10xf32>
    %c0_90 = arith.constant 0 : index
    %c1_91 = arith.constant 1 : index
    %c0_92 = arith.constant 0 : index
    %c0_93 = arith.constant 0 : index
    %100 = vector.load %arg10[%c0_90, %c1_91, %c0_92, %c0_93] : memref<1x3x1x10xf32, #tpu.memory_space<vmem>>, vector<1x1x1x10xf32>
    %101 = vector.shape_cast %100 : vector<1x1x1x10xf32> to vector<1x10xf32>
    %cst_94 = arith.constant dense<0.000000e+00> : vector<16x10xf32>
    %102 = tpu.matmul %97, %99, %cst_94 {dimension_numbers = #tpu.dot_dimension_numbers<[1], [0], [0], [1], [0, 0, 1, 1], [], []>} : vector<16x10xf32>, vector<10x10xf32>, vector<16x10xf32> -> vector<16x10xf32>
    %cst_95 = arith.constant dense<0.000000e+00> : vector<16x10xf32>
    %103 = tpu.matmul %87, %102, %cst_95 {dimension_numbers = #tpu.dot_dimension_numbers<[1], [0], [0], [1], [0, 0, 1, 1], [], []>} : vector<16x16xf32>, vector<16x10xf32>, vector<16x10xf32> -> vector<16x10xf32>
    %104 = vector.broadcast %101 : vector<1x10xf32> to vector<16x10xf32>
    %105 = arith.addf %103, %104 : vector<16x10xf32>
    %cst_96 = arith.constant 0.000000e+00 : f32
    %106 = vector.broadcast %cst_96 : f32 to vector<16x10xf32>
    %107 = arith.maximumf %105, %106 : vector<16x10xf32>
    %c0_97 = arith.constant 0 : index
    %c2_98 = arith.constant 2 : index
    %c0_99 = arith.constant 0 : index
    %c0_100 = arith.constant 0 : index
    %108 = vector.load %arg9[%c0_97, %c2_98, %c0_99, %c0_100] : memref<1x3x10x10xf32, #tpu.memory_space<vmem>>, vector<1x1x10x10xf32>
    %109 = vector.shape_cast %108 : vector<1x1x10x10xf32> to vector<10x10xf32>
    %c0_101 = arith.constant 0 : index
    %c2_102 = arith.constant 2 : index
    %c0_103 = arith.constant 0 : index
    %c0_104 = arith.constant 0 : index
    %110 = vector.load %arg10[%c0_101, %c2_102, %c0_103, %c0_104] : memref<1x3x1x10xf32, #tpu.memory_space<vmem>>, vector<1x1x1x10xf32>
    %111 = vector.shape_cast %110 : vector<1x1x1x10xf32> to vector<1x10xf32>
    %cst_105 = arith.constant dense<0.000000e+00> : vector<16x10xf32>
    %112 = tpu.matmul %107, %109, %cst_105 {dimension_numbers = #tpu.dot_dimension_numbers<[1], [0], [0], [1], [0, 0, 1, 1], [], []>} : vector<16x10xf32>, vector<10x10xf32>, vector<16x10xf32> -> vector<16x10xf32>
    %cst_106 = arith.constant dense<0.000000e+00> : vector<16x10xf32>
    %113 = tpu.matmul %87, %112, %cst_106 {dimension_numbers = #tpu.dot_dimension_numbers<[1], [0], [0], [1], [0, 0, 1, 1], [], []>} : vector<16x16xf32>, vector<16x10xf32>, vector<16x10xf32> -> vector<16x10xf32>
    %114 = vector.broadcast %111 : vector<1x10xf32> to vector<16x10xf32>
    %115 = arith.addf %113, %114 : vector<16x10xf32>
    %c0_107 = arith.constant 0 : index
    %c0_108 = arith.constant 0 : index
    %116 = vector.load %arg6[%c0_107, %c0_108] : memref<16x2xf32, #tpu.memory_space<vmem>>, vector<16x1xf32>
    %cst_109 = arith.constant 5.000000e-01 : f32
    %117 = vector.broadcast %cst_109 : f32 to vector<16x1xf32>
    %118 = arith.cmpf ogt, %116, %117 : vector<16x1xf32>
    %cst_110 = arith.constant -1.000000e+30 : f32
    %119 = vector.shape_cast %118 : vector<16x1xi1> to vector<16x1xi1>
    %120 = vector.broadcast %119 : vector<16x1xi1> to vector<16x10xi1>
    %121 = vector.broadcast %cst_110 : f32 to vector<16x10xf32>
    %122 = arith.select %120, %86, %121 : vector<16x10xi1>, vector<16x10xf32>
    %cst_111 = arith.constant dense<0xFF800000> : vector<10xf32>
    %123 = vector.multi_reduction <maximumf>, %122, %cst_111 [0] : vector<16x10xf32> to vector<10xf32>
    %124 = vector.shape_cast %123 : vector<10xf32> to vector<1x10xf32>
    %c0_112 = arith.constant 0 : index
    %c1_113 = arith.constant 1 : index
    %125 = vector.load %arg6[%c0_112, %c1_113] : memref<16x2xf32, #tpu.memory_space<vmem>>, vector<16x1xf32>
    %cst_114 = arith.constant 5.000000e-01 : f32
    %126 = vector.broadcast %cst_114 : f32 to vector<16x1xf32>
    %127 = arith.cmpf ogt, %125, %126 : vector<16x1xf32>
    %cst_115 = arith.constant -1.000000e+30 : f32
    %128 = vector.shape_cast %127 : vector<16x1xi1> to vector<16x1xi1>
    %129 = vector.broadcast %128 : vector<16x1xi1> to vector<16x10xi1>
    %130 = vector.broadcast %cst_115 : f32 to vector<16x10xf32>
    %131 = arith.select %129, %86, %130 : vector<16x10xi1>, vector<16x10xf32>
    %cst_116 = arith.constant dense<0xFF800000> : vector<10xf32>
    %132 = vector.multi_reduction <maximumf>, %131, %cst_116 [0] : vector<16x10xf32> to vector<10xf32>
    %133 = vector.shape_cast %132 : vector<10xf32> to vector<1x10xf32>
    %134 = tpu.concatenate %124, %133 in 0 : vector<1x10xf32>, vector<1x10xf32> -> vector<2x10xf32>
    %c0_117 = arith.constant 0 : index
    %c0_118 = arith.constant 0 : index
    %135 = vector.load %arg6[%c0_117, %c0_118] : memref<16x2xf32, #tpu.memory_space<vmem>>, vector<16x1xf32>
    %cst_119 = arith.constant 5.000000e-01 : f32
    %136 = vector.broadcast %cst_119 : f32 to vector<16x1xf32>
    %137 = arith.cmpf ogt, %135, %136 : vector<16x1xf32>
    %cst_120 = arith.constant -1.000000e+30 : f32
    %138 = vector.shape_cast %137 : vector<16x1xi1> to vector<16x1xi1>
    %139 = vector.broadcast %138 : vector<16x1xi1> to vector<16x10xi1>
    %140 = vector.broadcast %cst_120 : f32 to vector<16x10xf32>
    %141 = arith.select %139, %115, %140 : vector<16x10xi1>, vector<16x10xf32>
    %cst_121 = arith.constant dense<0xFF800000> : vector<10xf32>
    %142 = vector.multi_reduction <maximumf>, %141, %cst_121 [0] : vector<16x10xf32> to vector<10xf32>
    %143 = vector.shape_cast %142 : vector<10xf32> to vector<1x10xf32>
    %c0_122 = arith.constant 0 : index
    %c1_123 = arith.constant 1 : index
    %144 = vector.load %arg6[%c0_122, %c1_123] : memref<16x2xf32, #tpu.memory_space<vmem>>, vector<16x1xf32>
    %cst_124 = arith.constant 5.000000e-01 : f32
    %145 = vector.broadcast %cst_124 : f32 to vector<16x1xf32>
    %146 = arith.cmpf ogt, %144, %145 : vector<16x1xf32>
    %cst_125 = arith.constant -1.000000e+30 : f32
    %147 = vector.shape_cast %146 : vector<16x1xi1> to vector<16x1xi1>
    %148 = vector.broadcast %147 : vector<16x1xi1> to vector<16x10xi1>
    %149 = vector.broadcast %cst_125 : f32 to vector<16x10xf32>
    %150 = arith.select %148, %115, %149 : vector<16x10xi1>, vector<16x10xf32>
    %cst_126 = arith.constant dense<0xFF800000> : vector<10xf32>
    %151 = vector.multi_reduction <maximumf>, %150, %cst_126 [0] : vector<16x10xf32> to vector<10xf32>
    %152 = vector.shape_cast %151 : vector<10xf32> to vector<1x10xf32>
    %153 = tpu.concatenate %143, %152 in 0 : vector<1x10xf32>, vector<1x10xf32> -> vector<2x10xf32>
    %c0_127 = arith.constant 0 : index
    %c0_128 = arith.constant 0 : index
    %c0_129 = arith.constant 0 : index
    %c0_130 = arith.constant 0 : index
    %154 = vector.load %arg13[%c0_127, %c0_128, %c0_129, %c0_130] : memref<1x2x10x16xf32, #tpu.memory_space<vmem>>, vector<1x1x10x16xf32>
    %155 = vector.shape_cast %154 : vector<1x1x10x16xf32> to vector<10x16xf32>
    %cst_131 = arith.constant dense<0.000000e+00> : vector<2x16xf32>
    %156 = tpu.matmul %134, %155, %cst_131 {dimension_numbers = #tpu.dot_dimension_numbers<[1], [0], [0], [1], [0, 0, 1, 1], [], []>} : vector<2x10xf32>, vector<10x16xf32>, vector<2x16xf32> -> vector<2x16xf32>
    %c0_132 = arith.constant 0 : index
    %c1_133 = arith.constant 1 : index
    %c0_134 = arith.constant 0 : index
    %c0_135 = arith.constant 0 : index
    %157 = vector.load %arg13[%c0_132, %c1_133, %c0_134, %c0_135] : memref<1x2x10x16xf32, #tpu.memory_space<vmem>>, vector<1x1x10x16xf32>
    %158 = vector.shape_cast %157 : vector<1x1x10x16xf32> to vector<10x16xf32>
    %cst_136 = arith.constant dense<0.000000e+00> : vector<2x16xf32>
    %159 = tpu.matmul %153, %158, %cst_136 {dimension_numbers = #tpu.dot_dimension_numbers<[1], [0], [0], [1], [0, 0, 1, 1], [], []>} : vector<2x10xf32>, vector<10x16xf32>, vector<2x16xf32> -> vector<2x16xf32>
    %160 = arith.addf %156, %159 : vector<2x16xf32>
    %c0_137 = arith.constant 0 : index
    %c0_138 = arith.constant 0 : index
    %c0_139 = arith.constant 0 : index
    %161 = vector.load %arg14[%c0_137, %c0_138, %c0_139] : memref<1x1x16xf32, #tpu.memory_space<vmem>>, vector<1x1x16xf32>
    %162 = vector.shape_cast %161 : vector<1x1x16xf32> to vector<1x16xf32>
    %163 = vector.broadcast %162 : vector<1x16xf32> to vector<2x16xf32>
    %164 = arith.addf %160, %163 : vector<2x16xf32>
    %cst_140 = arith.constant 0.000000e+00 : f32
    %165 = vector.broadcast %cst_140 : f32 to vector<2x16xf32>
    %166 = arith.maximumf %164, %165 : vector<2x16xf32>
    %c0_141 = arith.constant 0 : index
    %c0_142 = arith.constant 0 : index
    %c0_143 = arith.constant 0 : index
    %167 = vector.load %arg16[%c0_141, %c0_142, %c0_143] : memref<1x2x16xf32, #tpu.memory_space<vmem>>, vector<1x2x16xf32>
    %168 = vector.shape_cast %167 : vector<1x2x16xf32> to vector<2x16xf32>
    %169 = vector.shape_cast %166 : vector<2x16xf32> to vector<1x2x16xf32>
    tpu.vector_store %arg16[%c0_141, %c0_142, %c0_143], %169 {strides = array<i32>} : memref<1x2x16xf32, #tpu.memory_space<vmem>>, vector<1x2x16xf32>,
    return
  }
  func.func @transform_0(%arg0: i32) -> (i32, i32, i32) {
    %c0_i32 = arith.constant 0 : i32
    %c0_i32_0 = arith.constant 0 : i32
    %c0_i32_1 = arith.constant 0 : i32
    return %arg0, %c0_i32, %c0_i32_0 : i32, i32, i32
  }
  func.func @transform_1(%arg0: i32) -> (i32, i32, i32) {
    %c0_i32 = arith.constant 0 : i32
    %c0_i32_0 = arith.constant 0 : i32
    %c0_i32_1 = arith.constant 0 : i32
    return %arg0, %c0_i32, %c0_i32_0 : i32, i32, i32
  }
  func.func @transform_2(%arg0: i32) -> (i32, i32) {
    %c0_i32 = arith.constant 0 : i32
    %c0_i32_0 = arith.constant 0 : i32
    %c0_i32_1 = arith.constant 0 : i32
    return %c0_i32, %c0_i32_0 : i32, i32
  }
  func.func @transform_3(%arg0: i32) -> (i32, i32) {
    %c0_i32 = arith.constant 0 : i32
    %c0_i32_0 = arith.constant 0 : i32
    %c0_i32_1 = arith.constant 0 : i32
    return %c0_i32, %c0_i32_0 : i32, i32
  }
  func.func @transform_4(%arg0: i32) -> (i32, i32) {
    %c0_i32 = arith.constant 0 : i32
    %c0_i32_0 = arith.constant 0 : i32
    %c0_i32_1 = arith.constant 0 : i32
    return %c0_i32, %c0_i32_0 : i32, i32
  }
  func.func @transform_5(%arg0: i32) -> (i32, i32) {
    %c0_i32 = arith.constant 0 : i32
    %c0_i32_0 = arith.constant 0 : i32
    %c0_i32_1 = arith.constant 0 : i32
    return %c0_i32, %c0_i32_0 : i32, i32
  }
  func.func @transform_6(%arg0: i32) -> (i32, i32, i32, i32) {
    %c0_i32 = arith.constant 0 : i32
    %c0_i32_0 = arith.constant 0 : i32
    %c0_i32_1 = arith.constant 0 : i32
    %c0_i32_2 = arith.constant 0 : i32
    return %arg0, %c0_i32, %c0_i32_0, %c0_i32_1 : i32, i32, i32, i32
  }
  func.func @transform_7(%arg0: i32) -> (i32, i32, i32, i32) {
    %c0_i32 = arith.constant 0 : i32
    %c0_i32_0 = arith.constant 0 : i32
    %c0_i32_1 = arith.constant 0 : i32
    %c0_i32_2 = arith.constant 0 : i32
    return %arg0, %c0_i32, %c0_i32_0, %c0_i32_1 : i32, i32, i32, i32
  }
  func.func @transform_8(%arg0: i32) -> (i32, i32, i32, i32) {
    %c0_i32 = arith.constant 0 : i32
    %c0_i32_0 = arith.constant 0 : i32
    %c0_i32_1 = arith.constant 0 : i32
    %c0_i32_2 = arith.constant 0 : i32
    return %arg0, %c0_i32, %c0_i32_0, %c0_i32_1 : i32, i32, i32, i32
  }
  func.func @transform_9(%arg0: i32) -> (i32, i32, i32, i32) {
    %c0_i32 = arith.constant 0 : i32
    %c0_i32_0 = arith.constant 0 : i32
    %c0_i32_1 = arith.constant 0 : i32
    %c0_i32_2 = arith.constant 0 : i32
    return %arg0, %c0_i32, %c0_i32_0, %c0_i32_1 : i32, i32, i32, i32
  }
  func.func @transform_10(%arg0: i32) -> (i32, i32, i32, i32) {
    %c0_i32 = arith.constant 0 : i32
    %c0_i32_0 = arith.constant 0 : i32
    %c0_i32_1 = arith.constant 0 : i32
    %c0_i32_2 = arith.constant 0 : i32
    return %arg0, %c0_i32, %c0_i32_0, %c0_i32_1 : i32, i32, i32, i32
  }
  func.func @transform_11(%arg0: i32) -> (i32, i32, i32) {
    %c0_i32 = arith.constant 0 : i32
    %c0_i32_0 = arith.constant 0 : i32
    %c0_i32_1 = arith.constant 0 : i32
    return %arg0, %c0_i32, %c0_i32_0 : i32, i32, i32
  }
  func.func @transform_12(%arg0: i32) -> (i32, i32, i32, i32) {
    %c0_i32 = arith.constant 0 : i32
    %c0_i32_0 = arith.constant 0 : i32
    %c0_i32_1 = arith.constant 0 : i32
    %c0_i32_2 = arith.constant 0 : i32
    return %arg0, %c0_i32, %c0_i32_0, %c0_i32_1 : i32, i32, i32, i32
  }
  func.func @transform_13(%arg0: i32) -> (i32, i32, i32) {
    %c0_i32 = arith.constant 0 : i32
    %c0_i32_0 = arith.constant 0 : i32
    %c0_i32_1 = arith.constant 0 : i32
    return %arg0, %c0_i32, %c0_i32_0 : i32, i32, i32
  }
  func.func @transform_14(%arg0: i32) -> (i32, i32, i32) {
    %c0_i32 = arith.constant 0 : i32
    %c0_i32_0 = arith.constant 0 : i32
    %c0_i32_1 = arith.constant 0 : i32
    return %arg0, %c0_i32, %c0_i32_0 : i32, i32, i32
  }
  func.func @transform_15(%arg0: i32) -> (i32, i32, i32) {
    %c0_i32 = arith.constant 0 : i32
    %c0_i32_0 = arith.constant 0 : i32
    %c0_i32_1 = arith.constant 0 : i32
    return %arg0, %c0_i32, %c0_i32_0 : i32, i32, i32
  }
}

module attributes {stable_mosaic.version = 11 : i64} {
  func.func @_fc1_kernel(%arg0: i32, %arg1: memref<5x2x64xf32, #tpu.memory_space<vmem>>, %arg2: memref<5x2x16xf32, #tpu.memory_space<vmem>>, %arg3: memref<5x64x64xf32, #tpu.memory_space<vmem>>, %arg4: memref<5x16x64xf32, #tpu.memory_space<vmem>>, %arg5: memref<1x64xf32, #tpu.memory_space<vmem>>, %arg6: memref<2x64xf32, #tpu.memory_space<vmem>>) attributes {dimension_semantics = [#tpu.dimension_semantics<arbitrary>], iteration_bounds = array<i64: 1>, scalar_prefetch = 0 : i64, scratch_operands = 0 : i64, tpu.core_type = #tpu.core_type<tc>, window_params = [{pipeline_mode = #tpu.pipeline_mode<synchronous>, transform_indices = @transform_0, window_bounds = array<i64: 5, 2, 64>}, {pipeline_mode = #tpu.pipeline_mode<synchronous>, transform_indices = @transform_1, window_bounds = array<i64: 5, 2, 16>}, {pipeline_mode = #tpu.pipeline_mode<synchronous>, transform_indices = @transform_2, window_bounds = array<i64: 5, 64, 64>}, {pipeline_mode = #tpu.pipeline_mode<synchronous>, transform_indices = @transform_3, window_bounds = array<i64: 5, 16, 64>}, {pipeline_mode = #tpu.pipeline_mode<synchronous>, transform_indices = @transform_4, window_bounds = array<i64: 1, 64>}, {pipeline_mode = #tpu.pipeline_mode<synchronous>, transform_indices = @transform_5, window_bounds = array<i64: 2, 64>}]} {
    %cst = arith.constant 0.000000e+00 : f32
    %0 = vector.broadcast %cst : f32 to vector<2x64xf32>
    %c0 = arith.constant 0 : index
    %c0_0 = arith.constant 0 : index
    %c0_1 = arith.constant 0 : index
    %1 = vector.load %arg1[%c0, %c0_0, %c0_1] : memref<5x2x64xf32, #tpu.memory_space<vmem>>, vector<1x2x64xf32>
    %2 = vector.shape_cast %1 : vector<1x2x64xf32> to vector<2x64xf32>
    %c0_2 = arith.constant 0 : index
    %c0_3 = arith.constant 0 : index
    %c0_4 = arith.constant 0 : index
    %3 = vector.load %arg3[%c0_2, %c0_3, %c0_4] : memref<5x64x64xf32, #tpu.memory_space<vmem>>, vector<1x64x64xf32>
    %4 = vector.shape_cast %3 : vector<1x64x64xf32> to vector<64x64xf32>
    %cst_5 = arith.constant dense<0.000000e+00> : vector<2x64xf32>
    %5 = tpu.matmul %2, %4, %cst_5 {dimension_numbers = #tpu.dot_dimension_numbers<[1], [0], [0], [1], [0, 0, 1, 1], [], []>} : vector<2x64xf32>, vector<64x64xf32>, vector<2x64xf32> -> vector<2x64xf32>
    %6 = arith.addf %0, %5 : vector<2x64xf32>
    %c0_6 = arith.constant 0 : index
    %c0_7 = arith.constant 0 : index
    %c0_8 = arith.constant 0 : index
    %7 = vector.load %arg2[%c0_6, %c0_7, %c0_8] : memref<5x2x16xf32, #tpu.memory_space<vmem>>, vector<1x2x16xf32>
    %8 = vector.shape_cast %7 : vector<1x2x16xf32> to vector<2x16xf32>
    %c0_9 = arith.constant 0 : index
    %c0_10 = arith.constant 0 : index
    %c0_11 = arith.constant 0 : index
    %9 = vector.load %arg4[%c0_9, %c0_10, %c0_11] : memref<5x16x64xf32, #tpu.memory_space<vmem>>, vector<1x16x64xf32>
    %10 = vector.shape_cast %9 : vector<1x16x64xf32> to vector<16x64xf32>
    %cst_12 = arith.constant dense<0.000000e+00> : vector<2x64xf32>
    %11 = tpu.matmul %8, %10, %cst_12 {dimension_numbers = #tpu.dot_dimension_numbers<[1], [0], [0], [1], [0, 0, 1, 1], [], []>} : vector<2x16xf32>, vector<16x64xf32>, vector<2x64xf32> -> vector<2x64xf32>
    %12 = arith.addf %6, %11 : vector<2x64xf32>
    %c1 = arith.constant 1 : index
    %c0_13 = arith.constant 0 : index
    %c0_14 = arith.constant 0 : index
    %13 = vector.load %arg1[%c1, %c0_13, %c0_14] : memref<5x2x64xf32, #tpu.memory_space<vmem>>, vector<1x2x64xf32>
    %14 = vector.shape_cast %13 : vector<1x2x64xf32> to vector<2x64xf32>
    %c1_15 = arith.constant 1 : index
    %c0_16 = arith.constant 0 : index
    %c0_17 = arith.constant 0 : index
    %15 = vector.load %arg3[%c1_15, %c0_16, %c0_17] : memref<5x64x64xf32, #tpu.memory_space<vmem>>, vector<1x64x64xf32>
    %16 = vector.shape_cast %15 : vector<1x64x64xf32> to vector<64x64xf32>
    %cst_18 = arith.constant dense<0.000000e+00> : vector<2x64xf32>
    %17 = tpu.matmul %14, %16, %cst_18 {dimension_numbers = #tpu.dot_dimension_numbers<[1], [0], [0], [1], [0, 0, 1, 1], [], []>} : vector<2x64xf32>, vector<64x64xf32>, vector<2x64xf32> -> vector<2x64xf32>
    %18 = arith.addf %12, %17 : vector<2x64xf32>
    %c1_19 = arith.constant 1 : index
    %c0_20 = arith.constant 0 : index
    %c0_21 = arith.constant 0 : index
    %19 = vector.load %arg2[%c1_19, %c0_20, %c0_21] : memref<5x2x16xf32, #tpu.memory_space<vmem>>, vector<1x2x16xf32>
    %20 = vector.shape_cast %19 : vector<1x2x16xf32> to vector<2x16xf32>
    %c1_22 = arith.constant 1 : index
    %c0_23 = arith.constant 0 : index
    %c0_24 = arith.constant 0 : index
    %21 = vector.load %arg4[%c1_22, %c0_23, %c0_24] : memref<5x16x64xf32, #tpu.memory_space<vmem>>, vector<1x16x64xf32>
    %22 = vector.shape_cast %21 : vector<1x16x64xf32> to vector<16x64xf32>
    %cst_25 = arith.constant dense<0.000000e+00> : vector<2x64xf32>
    %23 = tpu.matmul %20, %22, %cst_25 {dimension_numbers = #tpu.dot_dimension_numbers<[1], [0], [0], [1], [0, 0, 1, 1], [], []>} : vector<2x16xf32>, vector<16x64xf32>, vector<2x64xf32> -> vector<2x64xf32>
    %24 = arith.addf %18, %23 : vector<2x64xf32>
    %c2 = arith.constant 2 : index
    %c0_26 = arith.constant 0 : index
    %c0_27 = arith.constant 0 : index
    %25 = vector.load %arg1[%c2, %c0_26, %c0_27] : memref<5x2x64xf32, #tpu.memory_space<vmem>>, vector<1x2x64xf32>
    %26 = vector.shape_cast %25 : vector<1x2x64xf32> to vector<2x64xf32>
    %c2_28 = arith.constant 2 : index
    %c0_29 = arith.constant 0 : index
    %c0_30 = arith.constant 0 : index
    %27 = vector.load %arg3[%c2_28, %c0_29, %c0_30] : memref<5x64x64xf32, #tpu.memory_space<vmem>>, vector<1x64x64xf32>
    %28 = vector.shape_cast %27 : vector<1x64x64xf32> to vector<64x64xf32>
    %cst_31 = arith.constant dense<0.000000e+00> : vector<2x64xf32>
    %29 = tpu.matmul %26, %28, %cst_31 {dimension_numbers = #tpu.dot_dimension_numbers<[1], [0], [0], [1], [0, 0, 1, 1], [], []>} : vector<2x64xf32>, vector<64x64xf32>, vector<2x64xf32> -> vector<2x64xf32>
    %30 = arith.addf %24, %29 : vector<2x64xf32>
    %c2_32 = arith.constant 2 : index
    %c0_33 = arith.constant 0 : index
    %c0_34 = arith.constant 0 : index
    %31 = vector.load %arg2[%c2_32, %c0_33, %c0_34] : memref<5x2x16xf32, #tpu.memory_space<vmem>>, vector<1x2x16xf32>
    %32 = vector.shape_cast %31 : vector<1x2x16xf32> to vector<2x16xf32>
    %c2_35 = arith.constant 2 : index
    %c0_36 = arith.constant 0 : index
    %c0_37 = arith.constant 0 : index
    %33 = vector.load %arg4[%c2_35, %c0_36, %c0_37] : memref<5x16x64xf32, #tpu.memory_space<vmem>>, vector<1x16x64xf32>
    %34 = vector.shape_cast %33 : vector<1x16x64xf32> to vector<16x64xf32>
    %cst_38 = arith.constant dense<0.000000e+00> : vector<2x64xf32>
    %35 = tpu.matmul %32, %34, %cst_38 {dimension_numbers = #tpu.dot_dimension_numbers<[1], [0], [0], [1], [0, 0, 1, 1], [], []>} : vector<2x16xf32>, vector<16x64xf32>, vector<2x64xf32> -> vector<2x64xf32>
    %36 = arith.addf %30, %35 : vector<2x64xf32>
    %c3 = arith.constant 3 : index
    %c0_39 = arith.constant 0 : index
    %c0_40 = arith.constant 0 : index
    %37 = vector.load %arg1[%c3, %c0_39, %c0_40] : memref<5x2x64xf32, #tpu.memory_space<vmem>>, vector<1x2x64xf32>
    %38 = vector.shape_cast %37 : vector<1x2x64xf32> to vector<2x64xf32>
    %c3_41 = arith.constant 3 : index
    %c0_42 = arith.constant 0 : index
    %c0_43 = arith.constant 0 : index
    %39 = vector.load %arg3[%c3_41, %c0_42, %c0_43] : memref<5x64x64xf32, #tpu.memory_space<vmem>>, vector<1x64x64xf32>
    %40 = vector.shape_cast %39 : vector<1x64x64xf32> to vector<64x64xf32>
    %cst_44 = arith.constant dense<0.000000e+00> : vector<2x64xf32>
    %41 = tpu.matmul %38, %40, %cst_44 {dimension_numbers = #tpu.dot_dimension_numbers<[1], [0], [0], [1], [0, 0, 1, 1], [], []>} : vector<2x64xf32>, vector<64x64xf32>, vector<2x64xf32> -> vector<2x64xf32>
    %42 = arith.addf %36, %41 : vector<2x64xf32>
    %c3_45 = arith.constant 3 : index
    %c0_46 = arith.constant 0 : index
    %c0_47 = arith.constant 0 : index
    %43 = vector.load %arg2[%c3_45, %c0_46, %c0_47] : memref<5x2x16xf32, #tpu.memory_space<vmem>>, vector<1x2x16xf32>
    %44 = vector.shape_cast %43 : vector<1x2x16xf32> to vector<2x16xf32>
    %c3_48 = arith.constant 3 : index
    %c0_49 = arith.constant 0 : index
    %c0_50 = arith.constant 0 : index
    %45 = vector.load %arg4[%c3_48, %c0_49, %c0_50] : memref<5x16x64xf32, #tpu.memory_space<vmem>>, vector<1x16x64xf32>
    %46 = vector.shape_cast %45 : vector<1x16x64xf32> to vector<16x64xf32>
    %cst_51 = arith.constant dense<0.000000e+00> : vector<2x64xf32>
    %47 = tpu.matmul %44, %46, %cst_51 {dimension_numbers = #tpu.dot_dimension_numbers<[1], [0], [0], [1], [0, 0, 1, 1], [], []>} : vector<2x16xf32>, vector<16x64xf32>, vector<2x64xf32> -> vector<2x64xf32>
    %48 = arith.addf %42, %47 : vector<2x64xf32>
    %c4 = arith.constant 4 : index
    %c0_52 = arith.constant 0 : index
    %c0_53 = arith.constant 0 : index
    %49 = vector.load %arg1[%c4, %c0_52, %c0_53] : memref<5x2x64xf32, #tpu.memory_space<vmem>>, vector<1x2x64xf32>
    %50 = vector.shape_cast %49 : vector<1x2x64xf32> to vector<2x64xf32>
    %c4_54 = arith.constant 4 : index
    %c0_55 = arith.constant 0 : index
    %c0_56 = arith.constant 0 : index
    %51 = vector.load %arg3[%c4_54, %c0_55, %c0_56] : memref<5x64x64xf32, #tpu.memory_space<vmem>>, vector<1x64x64xf32>
    %52 = vector.shape_cast %51 : vector<1x64x64xf32> to vector<64x64xf32>
    %cst_57 = arith.constant dense<0.000000e+00> : vector<2x64xf32>
    %53 = tpu.matmul %50, %52, %cst_57 {dimension_numbers = #tpu.dot_dimension_numbers<[1], [0], [0], [1], [0, 0, 1, 1], [], []>} : vector<2x64xf32>, vector<64x64xf32>, vector<2x64xf32> -> vector<2x64xf32>
    %54 = arith.addf %48, %53 : vector<2x64xf32>
    %c4_58 = arith.constant 4 : index
    %c0_59 = arith.constant 0 : index
    %c0_60 = arith.constant 0 : index
    %55 = vector.load %arg2[%c4_58, %c0_59, %c0_60] : memref<5x2x16xf32, #tpu.memory_space<vmem>>, vector<1x2x16xf32>
    %56 = vector.shape_cast %55 : vector<1x2x16xf32> to vector<2x16xf32>
    %c4_61 = arith.constant 4 : index
    %c0_62 = arith.constant 0 : index
    %c0_63 = arith.constant 0 : index
    %57 = vector.load %arg4[%c4_61, %c0_62, %c0_63] : memref<5x16x64xf32, #tpu.memory_space<vmem>>, vector<1x16x64xf32>
    %58 = vector.shape_cast %57 : vector<1x16x64xf32> to vector<16x64xf32>
    %cst_64 = arith.constant dense<0.000000e+00> : vector<2x64xf32>
    %59 = tpu.matmul %56, %58, %cst_64 {dimension_numbers = #tpu.dot_dimension_numbers<[1], [0], [0], [1], [0, 0, 1, 1], [], []>} : vector<2x16xf32>, vector<16x64xf32>, vector<2x64xf32> -> vector<2x64xf32>
    %60 = arith.addf %54, %59 : vector<2x64xf32>
    %c0_65 = arith.constant 0 : index
    %c0_66 = arith.constant 0 : index
    %61 = vector.load %arg5[%c0_65, %c0_66] : memref<1x64xf32, #tpu.memory_space<vmem>>, vector<1x64xf32>
    %62 = vector.broadcast %61 : vector<1x64xf32> to vector<2x64xf32>
    %63 = arith.addf %60, %62 : vector<2x64xf32>
    %c0_67 = arith.constant 0 : index
    %c0_68 = arith.constant 0 : index
    %64 = vector.load %arg6[%c0_67, %c0_68] : memref<2x64xf32, #tpu.memory_space<vmem>>, vector<2x64xf32>
    tpu.vector_store %arg6[%c0_67, %c0_68], %63 {strides = array<i32>} : memref<2x64xf32, #tpu.memory_space<vmem>>, vector<2x64xf32>,
    return
  }
  func.func @transform_0(%arg0: i32) -> (i32, i32, i32) {
    %c0_i32 = arith.constant 0 : i32
    %c0_i32_0 = arith.constant 0 : i32
    %c0_i32_1 = arith.constant 0 : i32
    %c0_i32_2 = arith.constant 0 : i32
    return %c0_i32, %c0_i32_0, %c0_i32_1 : i32, i32, i32
  }
  func.func @transform_1(%arg0: i32) -> (i32, i32, i32) {
    %c0_i32 = arith.constant 0 : i32
    %c0_i32_0 = arith.constant 0 : i32
    %c0_i32_1 = arith.constant 0 : i32
    %c0_i32_2 = arith.constant 0 : i32
    return %c0_i32, %c0_i32_0, %c0_i32_1 : i32, i32, i32
  }
  func.func @transform_2(%arg0: i32) -> (i32, i32, i32) {
    %c0_i32 = arith.constant 0 : i32
    %c0_i32_0 = arith.constant 0 : i32
    %c0_i32_1 = arith.constant 0 : i32
    %c0_i32_2 = arith.constant 0 : i32
    return %c0_i32, %c0_i32_0, %c0_i32_1 : i32, i32, i32
  }
  func.func @transform_3(%arg0: i32) -> (i32, i32, i32) {
    %c0_i32 = arith.constant 0 : i32
    %c0_i32_0 = arith.constant 0 : i32
    %c0_i32_1 = arith.constant 0 : i32
    %c0_i32_2 = arith.constant 0 : i32
    return %c0_i32, %c0_i32_0, %c0_i32_1 : i32, i32, i32
  }
  func.func @transform_4(%arg0: i32) -> (i32, i32) {
    %c0_i32 = arith.constant 0 : i32
    %c0_i32_0 = arith.constant 0 : i32
    %c0_i32_1 = arith.constant 0 : i32
    return %c0_i32, %c0_i32_0 : i32, i32
  }
  func.func @transform_5(%arg0: i32) -> (i32, i32) {
    %c0_i32 = arith.constant 0 : i32
    %c0_i32_0 = arith.constant 0 : i32
    %c0_i32_1 = arith.constant 0 : i32
    return %c0_i32, %c0_i32_0 : i32, i32
  }
}

</mosaic_0001>

<bundles_post_ra>
// kernel: gcnnet_forward.3
= control target key start
LH: loop header
LB: loop body
LE: loop exit
PB: predicated region body
PF: predicated region fallthrough
CT: control target
= control target key end

     0   :  { %10 = vsyncpa [#allocation3], 0  ;;  %s687_s0 = inlined_call_operand.vmem [shape: f32[5,2,64], index: 0, kind: input, shape index: {}]   ;;  %s688_s1 = inlined_call_operand.vmem [shape: f32[5,2,16], index: 1, kind: input, shape index: {}]   ;;  %s689_s2 = inlined_call_operand.vmem [shape: f32[5,64,64], index: 2, kind: input, shape index: {}]   ;;  %s690_s3 = inlined_call_operand.hbm [shape: f32[5,16,64], index: 3, kind: input, shape index: {}]   ;;  %s691_s4 = inlined_call_operand.vmem [shape: f32[1,64], index: 4, kind: input, shape index: {}]   ;;  %s692_s5 = inlined_call_operand.hbm [shape: f32[2,64], index: 5, kind: output, shape index: {}]  }
   0x1   :  { %11 = vsyncpa [#allocation4], 0  ;;  %s22_s20 = sshll.u32 %s690_s3, 4  ;;  %s484_s21 = smov [#allocation2]   ;;  %s23_s20 = int_to_ptr.hbm [resolvable:$true] %s22_s20 }
   0x2   :  { %s24_s22 = sshll.u32 %s484_s21, 4  ;;  %s485_s23 = smov 128   ;;  %s25_s22 = int_to_ptr.vmem [resolvable:$true] %s24_s22 }
   0x3   :  { %s486_s24 = smov 8  }
   0x4   :  { %30 = dma.hbm_to_vmem [thread:$0]  %s23_s20, 1280, %s25_s22, [#allocation3], %s485_s23, %s485_s23, %s486_s24  }
   0x5   :  { %480 = dma.done.wait [#allocation3], 1280  }
   0x6   :  { %481 = vsyncadd [#allocation3], 4294966016  ;;  %v387_v0 = vld [vmem:[%s689_s2 + $0x78] sm:$0xff]  ;;  %v386_v1 = vld [vmem:[%s689_s2 + $0x70] sm:$0xff]  ;;  %vm49_vm0 = vcmask 130048   ;;  %vm73_vm1 = vcmask 523264  }
   0x7   :  { %v136_v2 = vld [vmem:[#allocation2 + $0x18] sm:$0xff]  ;;  %119 = vmatpush.msra.mxu2 %v387_v0  ;;  %v135_v4 = vld [vmem:[#allocation2 + $0x10] sm:$0xff]  ;;  %v385_v5 = vld [vmem:[%s689_s2 + $0x68] sm:$0xff]  ;;  %s367_s24 = sshll.u32 %s692_s5, 4  ;;  %vm358_vm2 = vcmask 517120   ;;  %s368_s24 = int_to_ptr.hbm [resolvable:$true] %s367_s24 }
   0x8   :  { %154 = vmatpush.msra.mxu3 %v136_v2  ;;  %v45_v3 = vld [vmem:[%s689_s2 + $0x38] sm:$0xff]  ;;  %v200_v6 = vld [vmem:[#allocation2 + $0x28] sm:$0xff]  ;;  %v44_v7 = vld [vmem:[%s689_s2 + $0x30] sm:$0xff] }
   0x9   :  { %85 = vmatpush.msra.mxu1 %v45_v3  ;;  %120 = vmatpush.msra.mxu2 %v386_v1  ;;  %v48_v8 = vld [vmem:[#allocation2 + $0x8] sm:$0xff]  ;;  %v389_v9 = vld [vmem:[%s688_s1 + $0x2] sm:$0x3]  ;;  %v411_v13 = vld [vmem:[%s689_s2 + $0xf8] sm:$0xff] }
   0xa   :  { %155 = vmatpush.msra.mxu3 %v135_v4  ;;  %v384_v10 = vld [vmem:[%s689_s2 + $0x60] sm:$0xff]  ;;  %v43_v12 = vld [vmem:[%s689_s2 + $0x28] sm:$0xff]  ;;  %67 = vmatpush.msra.mxu0 %v48_v8  ;;  %v383_v15 = vld [vmem:[%s689_s2 + $0x58] sm:$0xff] }
   0xb   :  { %86 = vmatpush.msra.mxu1 %v44_v7  ;;  %v199_v11 = vld [vmem:[#allocation2 + $0x20] sm:$0xff]  ;;  %121 = vmatpush.msra.mxu2 %v385_v5  ;;  %v399_v17 = vld [vmem:[%s689_s2 + $0xb8] sm:$0xff]  ;;  %v410_v18 = vld [vmem:[%s689_s2 + $0xf0] sm:$0xff] }
   0xc   :  { %218 = vmatpush.msrb.mxu3 %v200_v6  ;;  %v47_v14 = vld [vmem:[#allocation2] sm:$0xff]  ;;  %v382_v19 = vld [vmem:[%s689_s2 + $0x50] sm:$0xff]  ;;  %v41_v20 = vld [vmem:[%s689_s2 + $0x18] sm:$0xff] }
   0xd   :  { %390 = vmatmul.msk.f32.vlgmr.msra.gmra.mxu3 %vm49_vm0, %v389_v9  ;;  %87 = vmatpush.msra.mxu1 %v43_v12  ;;  %v42_v16 = vld [vmem:[%s689_s2 + $0x20] sm:$0xff]  ;;  %v398_v21 = vld [vmem:[%s689_s2 + $0xb0] sm:$0xff]  ;;  %v409_v22 = vld [vmem:[%s689_s2 + $0xe8] sm:$0xff] }
   0xe   :  { %122 = vmatpush.msra.mxu2 %v384_v10  ;;  %219 = vmatpush.msrb.mxu3 %v199_v11  ;;  %v381_v23 = vld [vmem:[%s689_s2 + $0x48] sm:$0xff]  ;;  %v40_v24 = vld [vmem:[%s689_s2 + $0x10] sm:$0xff]  ;;  %v408_v26 = vld [vmem:[%s689_s2 + $0xe0] sm:$0xff] }
   0xf   :  { %68 = vmatpush.msra.mxu0 %v47_v14  ;;  %88 = vmatpush.msra.mxu1 %v42_v16  ;;  %v397_v25 = vld [vmem:[%s689_s2 + $0xa8] sm:$0xff]  ;;  %v380_v27 = vld [vmem:[%s689_s2 + $0x40] sm:$0xff]  ;;  %v423_v31 = vld [vmem:[%s689_s2 + $0x138] sm:$0xff] }
  0x10   :  { %247 = vmatpush.msra.mxu3 %v411_v13  ;;  %123 = vmatpush.msra.mxu2 %v383_v15  ;;  %v401_v28 = vld [vmem:[%s688_s1 + $0x4] sm:$0x3]  ;;  %v379_v29 = vld [vmem:[%s687_s0 + $0x2] sm:$0x3]  ;;  %v39_v30 = vld [vmem:[%s689_s2 + $0x8] sm:$0xff] }
  0x11   :  { %183 = vmatpush.msrb.mxu0 %v399_v17  ;;  %89 = vmatpush.msra.mxu1 %v41_v20  ;;  %v396_v32 = vld [vmem:[%s689_s2 + $0xa0] sm:$0xff]  ;;  %v407_v33 = vld [vmem:[%s689_s2 + $0xd8] sm:$0xff]  ;;  %v422_v35 = vld [vmem:[%s689_s2 + $0x130] sm:$0xff] }
  0x12   :  { %248 = vmatpush.msra.mxu3 %v410_v18  ;;  %124 = vmatpush.msra.mxu2 %v382_v19  ;;  %v46_v34 = vld [vmem:[%s688_s1] sm:$0x3]  ;;  %v395_v37 = vld [vmem:[%s689_s2 + $0x98] sm:$0xff]  ;;  %v406_v38 = vld [vmem:[%s689_s2 + $0xd0] sm:$0xff] }
  0x13   :  { %184 = vmatpush.msrb.mxu0 %v398_v21  ;;  %90 = vmatpush.msra.mxu1 %v40_v24  ;;  %v38_v36 = vld [vmem:[%s689_s2] sm:$0xff]  ;;  %v421_v40 = vld [vmem:[%s689_s2 + $0x128] sm:$0xff]  ;;  %v394_v41 = vld [vmem:[%s689_s2 + $0x90] sm:$0xff] }
  0x14   :  { %249 = vmatpush.msra.mxu3 %v409_v22  ;;  %125 = vmatpush.msra.mxu2 %v381_v23  ;;  %v37_v39 = vld [vmem:[%s687_s0] sm:$0x3]  ;;  %v405_v42 = vld [vmem:[%s689_s2 + $0xc8] sm:$0xff]  ;;  %v264_v44 = vld [vmem:[#allocation2 + $0x38] sm:$0xff] }
  0x15   :  { %185 = vmatpush.msrb.mxu0 %v397_v25  ;;  %402 = vmatmul.msk.f32.vlgmr.msrb.gmra.mxu3 %vm49_vm0, %v401_v28  ;;  %v420_v43 = vld [vmem:[%s689_s2 + $0x120] sm:$0xff]  ;;  %v393_v45 = vld [vmem:[%s689_s2 + $0x88] sm:$0xff]  ;;  %v419_v48 = vld [vmem:[%s689_s2 + $0x118] sm:$0xff] }
  0x16   :  { %250 = vmatpush.msra.mxu3 %v408_v26  ;;  %126 = vmatpush.msra.mxu2 %v380_v27  ;;  %v404_v46 = vld [vmem:[%s689_s2 + $0xc0] sm:$0xff]  ;;  %v263_v50 = vld [vmem:[#allocation2 + $0x30] sm:$0xff]  ;;  %v328_v53 = vld [vmem:[#allocation2 + $0x48] sm:$0xff] }
  0x17   :  { %388 = vmatmul.msk.f32.vlgmr.msra.gmra.mxu2 %vm73_vm1, %v379_v29  ;;  %91 = vmatpush.msra.mxu1 %v39_v30  ;;  %v403_v47 = vld [vmem:[%s687_s0 + $0x6] sm:$0x3]  ;;  %v391_v51 = vld [vmem:[%s687_s0 + $0x4] sm:$0x3]  ;;  %v418_v52 = vld [vmem:[%s689_s2 + $0x110] sm:$0xff] }
  0x18   :  { %311 = vmatpush.msrb.mxu2 %v423_v31  ;;  %186 = vmatpush.msrb.mxu0 %v396_v32  ;;  %v392_v49 = vld [vmem:[%s689_s2 + $0x80] sm:$0xff]  ;;  %v417_v54 = vld [vmem:[%s689_s2 + $0x108] sm:$0xff] }
  0x19   :  { %251 = vmatpush.msra.mxu3 %v407_v33  ;;  %377 = vmatmul.msk.f32.vlgmr.msra.gmra.mxu0 %vm49_vm0, %v46_v34  ;;  %v413_v55 = vld [vmem:[%s688_s1 + $0x6] sm:$0x3]  ;;  %v415_v58 = vld [vmem:[%s687_s0 + $0x8] sm:$0x3]  ;;  %v431_v14 = vld [vmem:[%s691_s4] ss:$0 sm:$0xff] }
  0x1a   :  { %312 = vmatpush.msrb.mxu2 %v422_v35  ;;  %92 = vmatpush.msra.mxu1 %v38_v36  ;;  %v327_v56 = vld [vmem:[#allocation2 + $0x40] sm:$0xff]  ;;  %v425_v59 = vld [vmem:[%s688_s1 + $0x8] sm:$0x3] }
  0x1b   :  { %187 = vmatpush.msrb.mxu0 %v395_v37  ;;  %252 = vmatpush.msra.mxu3 %v406_v38  ;;  %v416_v57 = vld [vmem:[%s689_s2 + $0x100] sm:$0xff]  ;;  %s487_s2 = smov [#allocation5]  }
  0x1c   :  { %378 = vmatmul.msk.f32.vlgmr.msra.gmra.mxu1 %vm73_vm1, %v37_v39  ;;  %313 = vmatpush.msrb.mxu2 %v421_v40  ;;  %s365_s21 = sshll.u32 %s487_s2, 4  ;;  %s366_s21 = int_to_ptr.vmem [resolvable:$true] %s365_s21 }
  0x1d   :  { %188 = vmatpush.msrb.mxu0 %v394_v41  ;;  %253 = vmatpush.msra.mxu3 %v405_v42 }
  0x1e   :  { %314 = vmatpush.msrb.mxu2 %v420_v43  ;;  %282 = vmatpush.msrb.mxu1 %v264_v44 }
  0x1f   :  { %189 = vmatpush.msrb.mxu0 %v393_v45  ;;  %254 = vmatpush.msra.mxu3 %v404_v46 }
  0x20   :  { %412 = vmatmul.msk.f32.vlgmr.msra.gmra.mxu3 %vm73_vm1, %v403_v47  ;;  %315 = vmatpush.msrb.mxu2 %v419_v48 }
  0x21   :  { %190 = vmatpush.msrb.mxu0 %v392_v49  ;;  %283 = vmatpush.msrb.mxu1 %v263_v50 }
  0x22   :  { %400 = vmatmul.msk.f32.vlgmr.msrb.gmra.mxu0 %vm73_vm1, %v391_v51  ;;  %316 = vmatpush.msrb.mxu2 %v418_v52 }
  0x23   :  { %346 = vmatpush.msra.mxu0 %v328_v53 }
  0x24   :  { %317 = vmatpush.msrb.mxu2 %v417_v54  ;;  %414 = vmatmul.msk.f32.vlgmr.msrb.gmra.mxu1 %vm49_vm0, %v413_v55 }
  0x25   :  { %347 = vmatpush.msra.mxu0 %v327_v56 }
  0x26   :  { %318 = vmatpush.msrb.mxu2 %v416_v57 }
  0x27   :  { %424 = vmatmul.msk.f32.vlgmr.msrb.gmra.mxu2 %vm73_vm1, %v415_v58 }
  0x2a   :  { %426 = vmatmul.msk.f32.vlgmr.msra.gmra.mxu0 %vm49_vm0, %v425_v59 }
  0x90   :  { %v157_v60 = vpop.f32.mrf.mxu3 }
  0x96   :  { %v70_v61 = vpop.f32.mrf.mxu0 }
  0x98   :  { %v221_v63 = vpop.f32.mrf.mxu3 }
  0x99   :  { %v94_v62 = vpop.f32.mrf.mxu1 }
  0x9a   :  { %v95_v0 = vadd.f32 %v94_v62, %v70_v61  ;;  %v128_v1 = vpop.f32.mrf.mxu2 }
  0x9c   :  { %v131_v2 = vadd.f32 %v128_v1, %v95_v0 }
  0x9e   :  { %v160_v3 = vadd.f32 %v157_v60, %v131_v2 }
  0x9f   :  { %v192_v4 = vpop.f32.mrf.mxu0 }
  0xa0   :  { %v195_v5 = vadd.f32 %v192_v4, %v160_v3 }
  0xa1   :  { %v285_v9 = vpop.f32.mrf.mxu1 }
  0xa2   :  { %v224_v6 = vadd.f32 %v221_v63, %v195_v5 }
  0xa3   :  { %v256_v7 = vpop.f32.mrf.mxu3 }
  0xa4   :  { %v259_v8 = vadd.f32 %v256_v7, %v224_v6 }
  0xa6   :  { %v288_v10 = vadd.f32 %v285_v9, %v259_v8 }
  0xa7   :  { %v349_v12 = vpop.f32.mrf.mxu0 }
  0xaa   :  { %v320_v11 = vpop.f32.mrf.mxu2 }
  0xab   :  { %v323_v13 = vadd.f32 %v320_v11, %v288_v10 }
  0xad   :  { %v352_v15 = vadd.f32 %v349_v12, %v323_v13 }
  0xaf   :  { %v357_v16 = vadd.f32 %v431_v14, %v352_v15 }
  0xb1   :  { %359 = vst.msk [vmem:[#allocation5] sm:$0x3] %vm358_vm2, %v357_v16 }
  0xb2   :  { %370 = dma.vmem_to_hbm [thread:$0]  %s366_s21, 32, %s368_s24, [#allocation4]  }
  0xb3   :  { %482 = dma.done.wait [#allocation4], 32  }
  0xb4   :  { %483 = vsyncadd [#allocation4], 4294967264 }
  0xb5   :  { %375 = vsyncpa [#allocation3], 1 }
  0xb6   :  { %376 = vsyncpa [#allocation4], 1 }

// kernel: gcnnet_forward.2
= control target key start
LH: loop header
LB: loop body
LE: loop exit
PB: predicated region body
PF: predicated region fallthrough
CT: control target
= control target key end

     0   :  { %s2717_s0 = inlined_call_operand.vmem [shape: f32[5,16,62], index: 0, kind: input, shape index: {}]   ;;  %s2718_s1 = inlined_call_operand.hbm [shape: f32[5,16,10], index: 1, kind: input, shape index: {}]   ;;  %s2719_s2 = inlined_call_operand.vmem [shape: f32[16,16], index: 2, kind: input, shape index: {}]   ;;  %s2720_s3 = inlined_call_operand.hbm [shape: f32[16,16], index: 3, kind: input, shape index: {}]   ;;  %s2721_s4 = inlined_call_operand.vmem [shape: f32[16,2], index: 4, kind: input, shape index: {}]   ;;  %s2722_s5 = inlined_call_operand.vmem [shape: f32[16,2], index: 5, kind: input, shape index: {}]   ;;  %s2723_s6 = inlined_call_operand.vmem [shape: f32[5,3,62,62], index: 6, kind: input, shape index: {}]   ;;  %s2724_s7 = inlined_call_operand.hbm [shape: f32[5,3,1,62], index: 7, kind: input, shape index: {}]   ;;  %s2725_s8 = inlined_call_operand.vmem [shape: f32[5,3,10,10], index: 8, kind: input, shape index: {}]   ;;  %s2726_s9 = inlined_call_operand.hbm [shape: f32[5,3,1,10], index: 9, kind: input, shape index: {}]   ;;  %s2727_s10 = inlined_call_operand.vmem [shape: f32[5,2,62,64], index: 10, kind: input, shape index: {}]   ;;  %s2728_s11 = inlined_call_operand.hbm [shape: f32[5,1,64], index: 11, kind: input, shape index: {}]   ;;  %s2729_s12 = inlined_call_operand.vmem [shape: f32[5,2,10,16], index: 12, kind: input, shape index: {}]   ;;  %s2730_s13 = inlined_call_operand.hbm [shape: f32[5,1,16], index: 13, kind: input, shape index: {}]   ;;  %s2731_s14 = inlined_call_operand.vmem [shape: f32[5,2,64], index: 14, kind: output, shape index: {0}]   ;;  %s2732_s15 = inlined_call_operand.vmem [shape: f32[5,2,16], index: 15, kind: output, shape index: {1}]  }
   0x1   :  { %2740 = sst [smem:[#allocation16_spill]] %s2718_s1 }
   0x2   :  { %2741 = sst [smem:[#allocation17_spill]] %s2721_s4 }
   0x3   :  { %2742 = sst [smem:[#allocation18_spill]] %s2722_s5 }
   0x4   :  { %2743 = sst [smem:[#allocation19_spill]] %s2724_s7 }
   0x5   :  { %2744 = sst [smem:[#allocation20_spill]] %s2727_s10 }
   0x6   :  { %2745 = sst [smem:[#allocation21_spill]] %s2729_s12 }
   0x7   :  { %2746 = sst [smem:[#allocation22_spill]] %s2731_s14 }
   0x8   :  { %2747 = sst [smem:[#allocation23_spill]] %s2732_s15 }
   0x9   :  { %21 = vsyncpa [#allocation3], 0 }
   0xa   :  { %23 = vsyncpa [#allocation3 + $0x1], 0 }
   0xb   :  { %24 = vsyncpa [#allocation5], 0  ;;  %s2229_s18 = smov 0   ;;  %s2231_s19 = smov 0  }
   0xc   :  { %s2233_s20 = smov 0   ;;  %s2235_s21 = smov 0  }
   0xd LB: > { %2748 = sst [smem:[#allocation13_spill]] %s2136_s20  ;;  %s2250_s22 = sadd.s32 1, %s2140_s21   ;;  %s2140_s21 = sphi %s2235_s21, %s2767_s21   ;;  %s2136_s20 = sphi %s2233_s20, %s2769_s20   ;;  %s2132_s19 = sphi %s2231_s19, %s2771_s19   ;;  %s2128_s18 = sphi %s2229_s18, %s2770_s18  }
   0xe   : > { %2749 = sst [smem:[#allocation14_spill]] %s2250_s22  ;;  %s63_s23 = sadd.s32 1, %s2136_s20 }
   0xf   : > { %s60_s24 = ssub.s32 %s2140_s21, %s2250_s22  ;;  %p70_p0 = scmp.ne.s32.totalorder %s2136_s20, %s2132_s19 }
  0x10   : > { %p61_p1 = scmp.eq.s32.totalorder %s60_s24, 0  ;;  %p71_p2 = scmp.eq.s32.totalorder %s2140_s21, 0 }
  0x11   : > { %p1865_p4 = scmp.lt.s32.totalorder %s2140_s21, 5  ;;  %s475_s26 = sand.u32 1, %s2140_s21  }
  0x12   : > { %s2259_s25 = scalar_select %p61_p1, %s2136_s20, %s63_s23  }
  0x13   : > { %p72_p3 = por %p71_p2, %p70_p0  ;;  %s2264_s27 = sand.u32 1, %s2136_s20  }
  0x14   : > { %2750 = sst [smem:[#allocation15_spill]] %s2259_s25  ;;  %s1729_s28 = sshll.u32 %s2264_s27, 4 }
  0x15   : > { %s1819_s29 = sshll.u32 %s2140_s21, 4  ;;  %s2751_s1 = sld [smem:[#allocation16_spill]] }
  0x16   : > { %s479_s15 = scalar_lea.vmem [#allocation2], %s1729_s28  ;;  %p2271_p5 = pnand %p1865_p4, %p72_p3 }
  0x17   : > { %s487_s24 = sshll.u32 %s479_s15, 4  ;;  %s1824_s20 = smul.u32 3, %s2140_s21  ;;  %s488_s24 = int_to_ptr.vmem [resolvable:$true] %s487_s24 }
  0x18   : > { %s2277_s12 = scalar_lea.sflag [#allocation3], %s475_s26  ;;  %p2281_p7 = pneg %p2271_p5 }
  0x1b   : > { %s484_s17 = scalar_lea.hbm %s2751_s1, %s1819_s29  ;;  %s1925_s30 = scalar_lea.hbm %s2751_s1, 80 }
  0x1c   : > { %s485_s22 = sshll.u32 %s484_s17, 4  ;;  %s486_s22 = int_to_ptr.hbm [resolvable:$true] %s485_s22 }
  0x1d   : > { %s1918_s14 = sshra.s32 %s486_s22, 4  ;;  %s1919_s14 = int_to_ptr.hbm [resolvable:$true] %s1918_s14 }
  0x1e   : > { %s1920_s10 = scalar_lea.hbm %s1919_s14, 16  ;;  %p1926_p10 = scmp.lt.s32.totalorder %s1919_s14, %s2751_s1 }
  0x1f   : > { %p1921_p6 = scmp.ne.s32.totalorder %s1919_s14, %s1920_s10  ;;  %p1927_p11 = scmp.lt.s32.totalorder %s1925_s30, %s1920_s10 }
  0x21   : > { %p1923_p8 = pnand %p2281_p7, %p1921_p6  ;;  %p1928_p12 = por %p1927_p11, %p1926_p10 }
  0x23   : > { %p1924_p9 = pneg %p1923_p8 }
  0x25   : > { %p1929_p13 = pnand %p1928_p12, %p1924_p9 }
  0x27   : > { %1932 = shalt.err (!%p1929_p13)
}
  0x28   : > { %s2738_s17 = smov 128   ;;  %s2739_s25 = smov 8  }
  0x29   : > { %1851 = dma.hbm_to_vmem [thread:$0]  (!%p2271_p5), %s486_s22, 256, %s488_s24, %s2277_s12, %s2738_s17, %s2738_s17, %s2739_s25  }
  0x2a   : > { %s2754_s7 = sld [smem:[#allocation19_spill]]  ;;  %s2755_s14 = smul.u32 3, %s2264_s27 }
  0x2c   : > { %s509_s30 = scalar_lea.vmem [#allocation6], %s2755_s14 }
  0x2d   : > { %s516_s16 = sshll.u32 %s509_s30, 4  ;;  %s517_s16 = int_to_ptr.vmem [resolvable:$true] %s516_s16 }
  0x30   : > { %s513_s10 = scalar_lea.hbm %s2754_s7, %s1824_s20  ;;  %s1955_s24 = scalar_lea.hbm %s2754_s7, 15 }
  0x31   : > { %s514_s26 = sshll.u32 %s513_s10, 4  ;;  %s515_s26 = int_to_ptr.hbm [resolvable:$true] %s514_s26 }
  0x32   : > { %s1948_s1 = sshra.s32 %s515_s26, 4  ;;  %s1949_s1 = int_to_ptr.hbm [resolvable:$true] %s1948_s1 }
  0x33   : > { %s1950_s5 = scalar_lea.hbm %s1949_s1, 3  ;;  %p1956_p3 = scmp.lt.s32.totalorder %s1949_s1, %s2754_s7 }
  0x34   : > { %p1951_p0 = scmp.ne.s32.totalorder %s1949_s1, %s1950_s5  ;;  %p1957_p4 = scmp.lt.s32.totalorder %s1955_s24, %s1950_s5 }
  0x36   : > { %p1953_p1 = pnand %p1951_p0, %p2281_p7  ;;  %p1958_p6 = por %p1957_p4, %p1956_p3 }
  0x38   : > { %p1954_p2 = pneg %p1953_p1 }
  0x3a   : > { %p1959_p8 = pnand %p1958_p6, %p1954_p2 }
  0x3c   : > { %1962 = shalt.err (!%p1959_p8)
}
  0x3d   : > { %s2144_s28 = smov 16   ;;  %s2145_s10 = smov 1  }
  0x3e   : > { %1854 = dma.hbm_to_vmem [thread:$0]  (!%p2271_p5), %s515_s26, 48, %s517_s16, %s2277_s12, %s2144_s28, %s2144_s28, %s2145_s10  }
  0x3f   : > { %s542_s30 = scalar_lea.hbm %s2726_s9, %s1824_s20  ;;  %s2756_s1 = smul.u32 3, %s2264_s27 }
  0x40   : > { %s543_s17 = sshll.u32 %s542_s30, 4  ;;  %s1985_s26 = scalar_lea.hbm %s2726_s9, 15  ;;  %s544_s17 = int_to_ptr.hbm [resolvable:$true] %s543_s17 }
  0x41   : > { %s538_s5 = scalar_lea.vmem [#allocation7], %s2756_s1  ;;  %s1978_s24 = sshra.s32 %s544_s17, 4  ;;  %s1979_s24 = int_to_ptr.hbm [resolvable:$true] %s1978_s24 }
  0x42   : > { %s545_s22 = sshll.u32 %s538_s5, 4  ;;  %s1980_s15 = scalar_lea.hbm %s1979_s24, 3  ;;  %s546_s22 = int_to_ptr.vmem [resolvable:$true] %s545_s22 }
  0x43   : > { %p1981_p9 = scmp.ne.s32.totalorder %s1979_s24, %s1980_s15  ;;  %p1986_p12 = scmp.lt.s32.totalorder %s1979_s24, %s2726_s9 }
  0x44   : > { %p1987_p13 = scmp.lt.s32.totalorder %s1985_s26, %s1980_s15 }
  0x45   : > { %p1983_p10 = pnand %p1981_p9, %p2281_p7 }
  0x46   : > { %p1988_p0 = por %p1987_p13, %p1986_p12 }
  0x47   : > { %p1984_p11 = pneg %p1983_p10 }
  0x49   : > { %p1989_p1 = pnand %p1988_p0, %p1984_p11 }
  0x4b   : > { %1992 = shalt.err (!%p1989_p1)
}
  0x4c   : > { %1857 = dma.hbm_to_vmem [thread:$0]  (!%p2271_p5), %s544_s17, 48, %s546_s22, %s2277_s12, %s2144_s28, %s2144_s28, %s2145_s10  }
  0x4d   : > { %s569_s25 = scalar_lea.hbm %s2728_s11, %s2140_s21  ;;  %s566_s1 = scalar_lea.vmem [#allocation8], %s2264_s27 }
  0x4e   : > { %s571_s30 = sshll.u32 %s569_s25, 4  ;;  %s573_s5 = sshll.u32 %s566_s1, 4  ;;  %s572_s30 = int_to_ptr.hbm [resolvable:$true] %s571_s30  ;;  %s574_s5 = int_to_ptr.vmem [resolvable:$true] %s573_s5 }
  0x4f   : > { %s2008_s7 = sshra.s32 %s572_s30, 4  ;;  %s2015_s28 = scalar_lea.hbm %s2728_s11, 5  ;;  %s2009_s7 = int_to_ptr.hbm [resolvable:$true] %s2008_s7 }
  0x50   : > { %s2010_s24 = scalar_lea.hbm %s2009_s7, 1  ;;  %p2016_p6 = scmp.lt.s32.totalorder %s2009_s7, %s2728_s11 }
  0x51   : > { %p2011_p2 = scmp.ne.s32.totalorder %s2009_s7, %s2010_s24  ;;  %p2017_p8 = scmp.lt.s32.totalorder %s2015_s28, %s2010_s24 }
  0x53   : > { %p2013_p3 = pnand %p2011_p2, %p2281_p7  ;;  %p2018_p9 = por %p2017_p8, %p2016_p6 }
  0x55   : > { %p2014_p4 = pneg %p2013_p3 }
  0x57   : > { %p2019_p10 = pnand %p2018_p9, %p2014_p4 }
  0x59   : > { %2022 = shalt.err (!%p2019_p10)
}
  0x5a   : > { %1860 = dma.hbm_to_vmem [thread:$0]  (!%p2271_p5), %s572_s30, 16, %s574_s5, %s2277_s12  }
  0x5b   : > { %s2352_s22 = sadd.s32 4294967295, %s2140_s21   ;;  %p76_p12 = scmp.ne.s32.totalorder %s2132_s19, %s2128_s18 }
  0x5c   : > { %p77_p11 = scmp.eq.s32.totalorder %s2352_s22, 0  ;;  %p1726_p13 = scmp.ge.s32.totalorder %s2140_s21, 1 }
  0x5d   : > { %p431_p0 = scmp.lt.s32.totalorder %s2140_s21, 6  ;;  %s445_s14 = sshll.u32 %s2720_s3, 4  ;;  %s446_s14 = int_to_ptr.hbm [resolvable:$true] %s445_s14 }
  0x5e   : > { %p2361_p1 = por %p77_p11, %p76_p12  ;;  %s2146_s18 = smov [#allocation4]  }
  0x5f   : > { %p2368_p2 = pnand %p1726_p13, %p431_p0  ;;  %s447_s30 = sshll.u32 %s2146_s18, 4  ;;  %s448_s30 = int_to_ptr.vmem [resolvable:$true] %s447_s30 }
  0x60   : > { %s594_s7 = scalar_lea.hbm %s2730_s13, %s2140_s21  ;;  %s591_s15 = scalar_lea.vmem [#allocation9], %s2264_s27 }
  0x61   : > { %p1844_p3 = pneg %p2368_p2  ;;  %s596_s24 = sshll.u32 %s594_s7, 4  ;;  %s597_s24 = int_to_ptr.hbm [resolvable:$true] %s596_s24 }
  0x62   : > { %s598_s16 = sshll.u32 %s591_s15, 4  ;;  %s2759_s28 = smov 8   ;;  %s599_s16 = int_to_ptr.vmem [resolvable:$true] %s598_s16 }
  0x63   : > { %p1845_p4 = pnand %p1844_p3, %p77_p11  ;;  %s2760_s10 = smov 128  }
  0x64   : > { %s2068_s17 = sshra.s32 %s597_s24, 4  ;;  %s2075_s18 = scalar_lea.hbm %s2730_s13, 5  ;;  %s2069_s17 = int_to_ptr.hbm [resolvable:$true] %s2068_s17 }
  0x65   : > { %1847 = dma.hbm_to_vmem [thread:$0]  (!%p1845_p4), %s446_s14, 256, %s448_s30, [#allocation5], %s2760_s10, %s2760_s10, %s2759_s28  }
  0x66   : > { %s2070_s4 = scalar_lea.hbm %s2069_s17, 1  ;;  %p2076_p10 = scmp.lt.s32.totalorder %s2069_s17, %s2730_s13 }
  0x67   : > { %p2071_p6 = scmp.ne.s32.totalorder %s2069_s17, %s2070_s4  ;;  %p2077_p12 = scmp.lt.s32.totalorder %s2075_s18, %s2070_s4 }
  0x69   : > { %p2073_p8 = pnand %p2071_p6, %p2281_p7  ;;  %p2078_p13 = por %p2077_p12, %p2076_p10 }
  0x6b   : > { %p2074_p9 = pneg %p2073_p8 }
  0x6d   : > { %p2079_p0 = pnand %p2078_p13, %p2074_p9 }
  0x6f   : > { %2082 = shalt.err (!%p2079_p0)
}
  0x70   : > { %1863 = dma.hbm_to_vmem [thread:$0]  (!%p2271_p5), %s597_s24, 16, %s599_s16, %s2277_s12  }
  0x71   : > { %607 = sbr.rel (%p2368_p2) target bundleno = 1699 (0x6a3), region = 76  ;;  %s609_s27 = sand.u32 (!%p2368_p2), 1, %s2352_s22  }
  0x72   : > { %s2399_s29 = sand.u32 (!%p2368_p2), 1, %s2132_s19   ;;  %s610_s30 = scalar_lea.sflag (!%p2368_p2), [#allocation3], %s609_s27 }
  0x73   : > { %s1733_s14 = sshll.u32 (!%p2368_p2), %s2399_s29, 4 }
  0x74   : > { %s2402_s7 = scalar_lea.vmem (!%p2368_p2), [#allocation2], %s1733_s14 }
  0x76   : > { %2115 = dma.done.wait (%p2361_p1), %s610_s30, 256  }
  0x77   : > { %2117 = vsyncadd (%p2361_p1), %s610_s30, 4294967040 }
  0x78   : > { %2119 = dma.done.wait (%p77_p11), [#allocation5], 256  }
  0x79   : > { %2121 = vsyncadd (%p77_p11), [#allocation5], 4294967040  ;;  %s1827_s12 = smul.u32 3, %s2399_s29 }
  0x7b   : > { %s2415_s23 = scalar_lea.vmem [#allocation6], %s1827_s12 }
  0x7c   : > { %2123 = dma.done.wait (%p2361_p1), %s610_s30, 128  }
  0x7d   : > { %2125 = vsyncadd (%p2361_p1), %s610_s30, 4294967168  ;;  %p750_p5 = scmp.lt.s32.totalorder %s2352_s22, 4  ;;  %vm803_vm0 = vcmask 1045504   ;;  %vm796_vm1 = vcmask 506880   ;;  %v2461_v17 = vld [vmem:[%s2719_s2] sm:$0xff]  ;;  %vm833_vm2 = vcmask 130048  }
  0x7e   : > { %v2468_v18 = vld [vmem:[%s2719_s2 + $0x8] sm:$0xff]  ;;  %v1910_v22 = vld [vmem:[%s2415_s23] ss:$0 sm:$0xff]  ;;  %vm1165_vm3 = vcmask 1041408   ;;  %v1911_v41 = vld [vmem:[%s2415_s23 + $0x1] ss:$0 sm:$0xff] }
  0x7f   : > { %s2773_s22 = smov (!%p750_p5, %s2352_s22), 4  ;;  %v2504_v48 = vld [vmem:[%s2402_s7] sm:$0xff]  ;;  %vm1158_vm4 = vcmask 80896   ;;  %v2509_v49 = vld [vmem:[%s2402_s7 + $0x8] sm:$0xff]  ;;  %s2761_s24 = sld [smem:[#allocation17_spill]]  ;;  %v2147_v51 = vmov 0  }
  0x80   : > { %s1828_s25 = smul.u32 192, %s2773_s22  ;;  %s1820_s26 = sshll.u32 %s2773_s22, 4  ;;  %1906 = vset.pattern.permute.xlu0 %v2147_v51  ;;  %v2148_v52 = vmov 1   ;;  %1908 = vset.pattern.permute.xlu2 %v2147_v51  ;;  %vm1049_vm13 = vcmask 1040384  }
  0x81   : > { %s754_s17 = scalar_lea.vmem %s2717_s0, %s1820_s26  ;;  %s1829_s1 = smul.u32 48, %s2773_s22  ;;  %1907 = vset.pattern.permute.xlu1 %v2148_v52 }
  0x82   : > { %s2429_s16 = scalar_lea.vmem %s2723_s6, %s1828_s25  ;;  %v2444_v8 = vld [vmem:[%s754_s17] sm:$0xff]  ;;  %v2448_v9 = vld [vmem:[%s754_s17 + $0x8] sm:$0xff]  ;;  %s2762_s28 = sld [smem:[#allocation18_spill]] }
  0x83   : > { %v794_v0 = vld [vmem:[%s2429_s16 + $0x38] sm:$0x3f]  ;;  %v793_v1 = vld [vmem:[%s2429_s16 + $0x30] sm:$0xff]  ;;  %v792_v2 = vld [vmem:[%s2429_s16 + $0x28] sm:$0xff]  ;;  %s2495_s14 = scalar_lea.vmem %s2725_s8, %s1829_s1  ;;  %s2539_s4 = scalar_lea.vmem [#allocation7], %s1827_s12 }
  0x84   : > { %1745 = vmatpush.msk.msra.mxu0 %vm803_vm0, %v794_v0  ;;  %v791_v3 = vld [vmem:[%s2429_s16 + $0x20] sm:$0xff]  ;;  %v790_v4 = vld [vmem:[%s2429_s16 + $0x18] sm:$0xff]  ;;  %v789_v5 = vld [vmem:[%s2429_s16 + $0x10] sm:$0xff]  ;;  %s1821_s20 = sshll.u32 %s2773_s22, 7  ;;  %s2763_s1 = sld [smem:[#allocation20_spill]] }
  0x85   : > { %v788_v6 = vld [vmem:[%s2429_s16 + $0x8] sm:$0xff]  ;;  %v787_v7 = vld [vmem:[%s2429_s16] sm:$0xff]  ;;  %v1757_v10 = vld [vmem:[%s2429_s16 + $0x78] sm:$0x3f]  ;;  %s647_s12 = scalar_lea.vmem [#allocation8], %s2399_s29  ;;  %s2764_s25 = sld [smem:[#allocation22_spill]] }
  0x86   : > { %816 = vmatpush.msra.mxu0 %v793_v1  ;;  %v1756_v11 = vld [vmem:[%s2429_s16 + $0x70] sm:$0xff]  ;;  %1759 = vmatpush.msk.msra.mxu2 %vm803_vm0, %v1757_v10  ;;  %v1755_v12 = vld [vmem:[%s2429_s16 + $0x68] sm:$0xff]  ;;  %v1754_v13 = vld [vmem:[%s2429_s16 + $0x60] sm:$0xff]  ;;  %s2765_s10 = sld [smem:[#allocation21_spill]] }
  0x87   : > { %v1753_v14 = vld [vmem:[%s2429_s16 + $0x58] sm:$0xff]  ;;  %v1752_v19 = vld [vmem:[%s2429_s16 + $0x50] sm:$0xff]  ;;  %v1751_v20 = vld [vmem:[%s2429_s16 + $0x48] sm:$0xff]  ;;  %s2766_s21 = sld [smem:[#allocation23_spill]] }
  0x88   : > { %817 = vmatpush.msra.mxu0 %v792_v2  ;;  %894 = vmatpush.msra.mxu2 %v1756_v11  ;;  %v1750_v21 = vld [vmem:[%s2429_s16 + $0x40] sm:$0xff]  ;;  %v1771_v29 = vld [vmem:[%s2429_s16 + $0xb8] sm:$0x3f]  ;;  %v1770_v30 = vld [vmem:[%s2429_s16 + $0xb0] sm:$0xff] }
  0x89   : > { %v1769_v31 = vld [vmem:[%s2429_s16 + $0xa8] sm:$0xff]  ;;  %v1768_v32 = vld [vmem:[%s2429_s16 + $0xa0] sm:$0xff]  ;;  %v1767_v33 = vld [vmem:[%s2429_s16 + $0x98] sm:$0xff] }
  0x8a   : > { %818 = vmatpush.msra.mxu0 %v791_v3  ;;  %895 = vmatpush.msra.mxu2 %v1755_v12  ;;  %v1766_v36 = vld [vmem:[%s2429_s16 + $0x90] sm:$0xff]  ;;  %v1765_v37 = vld [vmem:[%s2429_s16 + $0x88] sm:$0xff]  ;;  %v1764_v38 = vld [vmem:[%s2429_s16 + $0x80] sm:$0xff]  ;;  %s2549_s5 = scalar_lea.vmem %s2763_s1, %s1821_s20  ;;  %s1822_s16 = sshll.u32 %s2773_s22, 5 }
  0x8b   : > { %v1156_v39 = vld [vmem:[%s2495_s14 + $0x8] sm:$0x3]  ;;  %v1155_v40 = vld [vmem:[%s2495_s14] sm:$0xff] }
  0x8c   : > { %819 = vmatpush.msra.mxu0 %v790_v4  ;;  %896 = vmatpush.msra.mxu2 %v1754_v13  ;;  %v1005_v50 = vld [vmem:[%s2761_s24] sm:$0xff]  ;;  %v1006_v54 = vld [vmem:[%s2761_s24 + $0x8] sm:$0xff]  ;;  %v1081_v4 = vld [vmem:[%s2549_s5 + $0x38] sm:$0x3f]  ;;  %s2657_s17 = scalar_lea.vmem %s2765_s10, %s1822_s16 }
  0x8d   : > { %vm1007_vm5 = vcmp.gt.f32.partialorder %v1005_v50, 0.5  ;;  %vm1008_vm6 = vcmp.gt.f32.partialorder %v1006_v54, 0.5  ;;  %v1355_v56 = vld [vmem:[%s2762_s28 + $0x8] sm:$0xff]  ;;  %v1354_v57 = vld [vmem:[%s2762_s28] sm:$0xff]  ;;  %v1912_v50 = vld [vmem:[%s2415_s23 + $0x2] ss:$0 sm:$0xff] }
  0x8e   : > { %820 = vmatpush.msra.mxu0 %v789_v5  ;;  %897 = vmatpush.msra.mxu2 %v1753_v14  ;;  %v1009_v53 = vsel %vm1007_vm5, 1, %v2147_v51  ;;  %v1010_v55 = vsel %vm1008_vm6, 1, %v2147_v51  ;;  %vm1357_vm7 = vcmp.gt.f32.partialorder %v1355_v56, 0.5  ;;  %vm1356_vm8 = vcmp.gt.f32.partialorder %v1354_v57, 0.5  ;;  %v2529_v0 = vld [vmem:[#allocation4] sm:$0xff]  ;;  %v2533_v1 = vld [vmem:[#allocation4 + $0x8] sm:$0xff] }
  0x8f   : > { %1012 = vperm.xlu0 %1906, %v1009_v53   ;;  %1031 = vperm.xlu1 %1907, %v1009_v53   ;;  %v1359_v58 = vsel %vm1357_vm7, 1, %v2147_v51  ;;  %v1358_v59 = vsel %vm1356_vm8, 1, %v2147_v51  ;;  %s1743_s23 = sshll.u32 %s2773_s22, 1  ;;  %vm1149_vm5 = vcmask 517120  }
  0x90   : > { %821 = vmatpush.msra.mxu0 %v788_v6  ;;  %898 = vmatpush.msra.mxu2 %v1752_v19  ;;  %s778_s15 = scalar_lea.vmem %s2764_s25, %s1743_s23  ;;  %s782_s18 = scalar_lea.vmem %s2766_s21, %s1743_s23 }
  0x91   : > { %1361 = vperm.xlu2 %1908, %v1358_v59  }
  0x92   : > { %822 = vmatpush.msra.mxu0 %v787_v7  ;;  %899 = vmatpush.msra.mxu2 %v1751_v20 }
  0x93   : > { %1746 = vmatmul.msk.f32.vlgmr.msra.gmra.mxu0 %vm796_vm1, %v2444_v8 }
  0x94   : > { %900 = vmatpush.msra.mxu2 %v1750_v21 }
  0x96   : > { %1788 = vmatpush.msk.msrb.mxu2 %vm803_vm0, %v1081_v4 }
  0x97   : > { %1015 = vperm.xlu0 %1906, %v1010_v55   ;;  %1034 = vperm.xlu1 %1907, %v1010_v55  }
  0x99   : > { %1364 = vperm.xlu2 %1908, %v1359_v58  }
  0x9b   : > { %1747 = vmatmul.msk.f32.gmra.mxu0 %vm796_vm1, %v2448_v9 }
  0x9f   : > { %1909 = vset.pattern.permute.xlu0 %v2148_v52  ;;  %1383 = vperm.xlu1 %1907, %v1359_v58  }
  0xa0   : > { %1380 = vperm.xlu0 %1909, %v1358_v59  }
 0x101   : > { %v2542_v2 = vpop.permute.xlu1 %1031  ;;  %v2544_v3 = vpop.permute.xlu0 %1012 }
 0x102   : > { %vm1036_vm9 = vcmp.eq.s32.totalorder %v2542_v2, 1  ;;  %vm1017_vm10 = vcmp.eq.s32.totalorder %v2544_v3, 1 }
 0x103   : > { %v1038_v5 = vsel %vm1036_vm9, %v2444_v8, -1e+30  ;;  %v1019_v6 = vsel %vm1017_vm10, %v2444_v8, -1e+30 }
 0x104   : > { %v1040_v11 = vsel %vm796_vm1, %v1038_v5, -inf  ;;  %v1021_v12 = vsel %vm796_vm1, %v1019_v6, -inf }
 0x109   : > { %v2561_v7 = vpop.permute.xlu1 %1034  ;;  %v2563_v10 = vpop.permute.xlu0 %1015 }
 0x10a   : > { %vm1037_vm11 = vcmp.eq.s32.totalorder %v2561_v7, 1  ;;  %vm1018_vm12 = vcmp.eq.s32.totalorder %v2563_v10, 1 }
 0x10b   : > { %v1039_v13 = vsel %vm1037_vm11, %v2448_v9, -1e+30  ;;  %v1020_v8 = vsel %vm1018_vm12, %v2448_v9, -1e+30 }
 0x10c   : > { %v1041_v14 = vsel %vm796_vm1, %v1039_v13, -inf }
 0x110   : > { %v824_v15 = vpop.f32.mrf.mxu0 }
 0x118   : > { %v827_v16 = vpop.f32.mrf.mxu0 }
 0x119   : > { %854 = vmatpush.msra.mxu1 %v827_v16  ;;  %v1042_v16 = vmax.f32 %v1040_v11, %v1041_v14  ;;  %v1913_v14 = vld [vmem:[%s2539_s4] ss:$0 sm:$0xff] }
 0x11b   : > { %855 = vmatpush.msra.mxu1 %v824_v15  ;;  %v1022_v15 = vsel %vm796_vm1, %v1020_v8, -inf }
 0x11c   : > { %1748 = vmatmul.msk.f32.vlgmr.msra.gmra.mxu1 %vm833_vm2, %v2461_v17 }
 0x11d   : > { %1773 = vmatpush.msk.msrb.mxu1 %vm803_vm0, %v1771_v29 }
 0x11f   : > { %965 = vmatpush.msrb.mxu1 %v1770_v30 }
 0x121   : > { %966 = vmatpush.msrb.mxu1 %v1769_v31  ;;  %v1076_v31 = vld [vmem:[%s2549_s5 + $0x10] sm:$0xff] }
 0x123   : > { %967 = vmatpush.msrb.mxu1 %v1768_v32  ;;  %v1075_v32 = vld [vmem:[%s2549_s5 + $0x8] sm:$0xff] }
 0x124   : > { %1749 = vmatmul.msk.f32.gmra.mxu1 %vm833_vm2, %v2468_v18 }
 0x125   : > { %968 = vmatpush.msrb.mxu1 %v1767_v33 }
 0x127   : > { %969 = vmatpush.msrb.mxu1 %v1766_v36  ;;  %v1074_v36 = vld [vmem:[%s2549_s5] sm:$0xff] }
 0x129   : > { %970 = vmatpush.msrb.mxu1 %v1765_v37 }
 0x12b   : > { %971 = vmatpush.msrb.mxu1 %v1764_v38  ;;  %v1784_v38 = vld [vmem:[%s2549_s5 + $0x70] sm:$0xff] }
 0x12d   : > { %1790 = vmatpush.msk.msra.mxu1 %vm1165_vm3, %v1156_v39  ;;  %v1783_v39 = vld [vmem:[%s2549_s5 + $0x68] sm:$0xff] }
 0x12f   : > { %1184 = vmatpush.msra.mxu1 %v1155_v40  ;;  %v1782_v40 = vld [vmem:[%s2549_s5 + $0x60] sm:$0xff] }
 0x199   : > { %v857_v23 = vpop.f32.mrf.mxu1 }
 0x19a   : > { %v858_v24 = vadd.f32 %v1910_v22, %v857_v23 }
 0x19c   : > { %v863_v25 = vmax.f32 %v858_v24, 0.0  ;;  %v1080_v24 = vld [vmem:[%s2549_s5 + $0x30] sm:$0xff] }
 0x19d   : > { %1132 = vmatpush.msrb.mxu2 %v1080_v24 }
 0x19e   : > { %1760 = vmatmul.msk.f32.vlgmr.msra.gmra.mxu2 %vm796_vm1, %v863_v25  ;;  %v1079_v25 = vld [vmem:[%s2549_s5 + $0x28] sm:$0xff] }
 0x19f   : > { %1133 = vmatpush.msrb.mxu2 %v1079_v25  ;;  %v2621_v25 = vpop.permute.xlu1 %1383 }
 0x1a1   : > { %v860_v26 = vpop.f32.mrf.mxu1 }
 0x1a2   : > { %v861_v27 = vadd.f32 %v1910_v22, %v860_v26 }
 0x1a4   : > { %v864_v28 = vmax.f32 %v861_v27, 0.0  ;;  %v1078_v27 = vld [vmem:[%s2549_s5 + $0x20] sm:$0xff] }
 0x1a5   : > { %1134 = vmatpush.msrb.mxu2 %v1078_v27 }
 0x1a6   : > { %1761 = vmatmul.msk.f32.gmra.mxu2 %vm796_vm1, %v864_v28  ;;  %v1077_v28 = vld [vmem:[%s2549_s5 + $0x18] sm:$0xff] }
 0x1a7   : > { %1135 = vmatpush.msrb.mxu2 %v1077_v28 }
 0x1a9   : > { %1136 = vmatpush.msrb.mxu2 %v1076_v31 }
 0x1ab   : > { %1137 = vmatpush.msrb.mxu2 %v1075_v32 }
 0x1ad   : > { %1138 = vmatpush.msrb.mxu2 %v1074_v36 }
 0x221   : > { %v902_v34 = vpop.f32.mrf.mxu2 }
 0x229   : > { %v905_v35 = vpop.f32.mrf.mxu2 }
 0x22a   : > { %925 = vmatpush.msra.mxu3 %v905_v35  ;;  %v1785_v35 = vld [vmem:[%s2549_s5 + $0x78] sm:$0x3f] }
 0x22b   : > { %1786 = vmatpush.msk.msrb.mxu0 %vm803_vm0, %v1785_v35  ;;  %vm1386_vm0 = vcmp.eq.s32.totalorder %v2621_v25, 1 }
 0x22c   : > { %926 = vmatpush.msra.mxu3 %v902_v34  ;;  %v1388_v31 = vsel %vm1386_vm0, %v2509_v49, -1e+30 }
 0x22d   : > { %1762 = vmatmul.msk.f32.vlgmr.msra.gmra.mxu3 %vm833_vm2, %v2461_v17  ;;  %1106 = vmatpush.msrb.mxu0 %v1784_v38 }
 0x22f   : > { %1107 = vmatpush.msrb.mxu0 %v1783_v39 }
 0x231   : > { %1108 = vmatpush.msrb.mxu0 %v1782_v40 }
 0x235   : > { %1763 = vmatmul.msk.f32.gmra.mxu3 %vm833_vm2, %v2468_v18 }
 0x2b0   : > { %v928_v42 = vpop.f32.mrf.mxu3 }
 0x2b1   : > { %v929_v43 = vadd.f32 %v1911_v41, %v928_v42  ;;  %v1780_v42 = vld [vmem:[%s2549_s5 + $0x50] sm:$0xff] }
 0x2b3   : > { %v934_v44 = vmax.f32 %v929_v43, 0.0  ;;  %v1779_v43 = vld [vmem:[%s2549_s5 + $0x48] sm:$0xff] }
 0x2b5   : > { %1774 = vmatmul.msk.f32.vlgmr.msrb.gmra.mxu1 %vm796_vm1, %v934_v44  ;;  %v1778_v44 = vld [vmem:[%s2549_s5 + $0x40] sm:$0xff] }
 0x2b8   : > { %v931_v45 = vpop.f32.mrf.mxu3 }
 0x2b9   : > { %v932_v46 = vadd.f32 %v1911_v41, %v931_v45  ;;  %v1781_v41 = vld [vmem:[%s2549_s5 + $0x58] sm:$0xff] }
 0x2ba   : > { %1109 = vmatpush.msrb.mxu0 %v1781_v41  ;;  %v1796_v45 = vld [vmem:[%s2495_s14 + $0x18] sm:$0x3] }
 0x2bb   : > { %v935_v47 = vmax.f32 %v932_v46, 0.0  ;;  %v1795_v46 = vld [vmem:[%s2495_s14 + $0x10] sm:$0xff] }
 0x2bc   : > { %1110 = vmatpush.msrb.mxu0 %v1780_v42 }
 0x2bd   : > { %1775 = vmatmul.msk.f32.gmra.mxu1 %vm796_vm1, %v935_v47 }
 0x2be   : > { %1111 = vmatpush.msrb.mxu0 %v1779_v43 }
 0x2c0   : > { %1112 = vmatpush.msrb.mxu0 %v1778_v44 }
 0x2c2   : > { %1798 = vmatpush.msk.msra.mxu0 %vm1165_vm3, %v1796_v45 }
 0x2c4   : > { %1255 = vmatpush.msra.mxu0 %v1795_v46  ;;  %v1423_v46 = vld [vmem:[%s2657_s17 + $0x8] sm:$0x3] }
 0x2c5   : > { %1791 = vmatmul.msk.f32.vlgmr.msra.gmra.mxu1 %vm1158_vm4, %v2504_v48 }
 0x2cd   : > { %1792 = vmatmul.msk.f32.gmra.mxu1 %vm1158_vm4, %v2509_v49 }
 0x332   : > { %v973_v60 = vpop.f32.mrf.mxu1 }
 0x33a   : > { %v976_v61 = vpop.f32.mrf.mxu1 }
 0x33b   : > { %996 = vmatpush.msrb.mxu3 %v976_v61 }
 0x33d   : > { %997 = vmatpush.msrb.mxu3 %v973_v60 }
 0x33e   : > { %1776 = vmatmul.msk.f32.vlgmr.msrb.gmra.mxu3 %vm833_vm2, %v2461_v17  ;;  %v1023_v17 = vmax.f32 %v1021_v12, %v1022_v15 }
 0x340   : > { %v1024_v19 = vrot.slane %v1023_v17, 4 }
 0x342   : > { %v1186_v62 = vpop.f32.mrf.mxu1  ;;  %v1025_v21 = vmax.f32 %v1023_v17, %v1024_v19 }
 0x344   : > { %v1026_v23 = vrot.slane %v1025_v21, 2 }
 0x346   : > { %1777 = vmatmul.msk.f32.gmra.mxu3 %vm833_vm2, %v2468_v18  ;;  %v1043_v18 = vrot.slane %v1042_v16, 4  ;;  %v1027_v26 = vmax.f32 %v1025_v21, %v1026_v23  ;;  %v2617_v23 = vpop.permute.xlu2 %1361 }
 0x347   : > { %vm1366_vm14 = vcmp.eq.s32.totalorder %v2617_v23, 1 }
 0x348   : > { %v1044_v20 = vmax.f32 %v1042_v16, %v1043_v18  ;;  %v1028_v30 = vrot.slane %v1027_v26, 1  ;;  %v1368_v27 = vsel %vm1366_vm14, %v2504_v48, -1e+30 }
 0x34a   : > { %v1189_v63 = vpop.f32.mrf.mxu1  ;;  %v1045_v22 = vrot.slane %v1044_v20, 2  ;;  %v1029_v33 = vmax.f32 %v1027_v26, %v1028_v30  ;;  %v1914_v26 = vld [vmem:[%s647_s12] ss:$0 sm:$0xff] }
 0x34b   : > { %1215 = vmatpush.msra.mxu3 %v1189_v63 }
 0x34c   : > { %v1046_v9 = vmax.f32 %v1044_v20, %v1045_v22 }
 0x34d   : > { %1216 = vmatpush.msra.mxu3 %v1186_v62 }
 0x34e   : > { %1793 = vmatmul.msk.f32.vlgmr.msra.gmra.mxu3 %vm833_vm2, %v2529_v0  ;;  %v1047_v29 = vrot.slane %v1046_v9, 1  ;;  %v2619_v24 = vpop.permute.xlu2 %1364 }
 0x34f   : > { %vm1367_vm15 = vcmp.eq.s32.totalorder %v2619_v24, 1 }
 0x350   : > { %v1048_v34 = vmax.f32 %v1046_v9, %v1047_v29  ;;  %v2623_v9 = vpop.permute.xlu0 %1380  ;;  %v1369_v28 = vsel %vm1367_vm15, %v2509_v49, -1e+30 }
 0x351   : > { %v1371_v36 = vsel %vm1158_vm4, %v1369_v28, -inf }
 0x352   : > { %v1050_v37 = vsel %vm1049_vm13, %v1029_v33, %v1048_v34  ;;  %v1370_v34 = vsel %vm1158_vm4, %v1368_v27, -inf }
 0x353   : > { %1789 = vmatmul.msk.f32.vlgmr.msrb.gmra.mxu2 %vm796_vm1, %v1050_v37  ;;  %v1390_v37 = vsel %vm1158_vm4, %v1388_v31, -inf }
 0x356   : > { %1794 = vmatmul.msk.f32.gmra.mxu3 %vm833_vm2, %v2533_v1 }
 0x3c1   : > { %v999_v47 = vpop.f32.mrf.mxu3 }
 0x3c2   : > { %v1000_v51 = vadd.f32 %v1912_v50, %v999_v47 }
 0x3c4   : > { %v1051_v53 = vsel %vm1017_vm10, %v1000_v51, -1e+30  ;;  %v1062_v54 = vsel %vm1036_vm9, %v1000_v51, -1e+30  ;;  %v1422_v51 = vld [vmem:[%s2657_s17] sm:$0xff] }
 0x3c5   : > { %v1053_v58 = vsel %vm796_vm1, %v1051_v53, -inf  ;;  %v1064_v59 = vsel %vm796_vm1, %v1062_v54, -inf }
 0x3c9   : > { %v1002_v52 = vpop.f32.mrf.mxu3 }
 0x3ca   : > { %v1003_v55 = vadd.f32 %v1912_v50, %v1002_v52 }
 0x3cc   : > { %v1052_v56 = vsel %vm1018_vm12, %v1003_v55, -1e+30  ;;  %v1063_v57 = vsel %vm1037_vm11, %v1003_v55, -1e+30 }
 0x3cd   : > { %v1054_v60 = vsel %vm796_vm1, %v1052_v56, -inf  ;;  %v1065_v61 = vsel %vm796_vm1, %v1063_v57, -inf }
 0x3ce   : > { %v1055_v62 = vmax.f32 %v1053_v58, %v1054_v60  ;;  %v1066_v63 = vmax.f32 %v1064_v59, %v1065_v61  ;;  %v1804_v59 = vld [vmem:[%s2495_s14 + $0x28] sm:$0x3]  ;;  %v1803_v60 = vld [vmem:[%s2495_s14 + $0x20] sm:$0xff]  ;;  %v1915_v61 = vld [vmem:[%s2539_s4 + $0x1] ss:$0 sm:$0xff]  ;;  %s656_s14 = scalar_lea.vmem [#allocation9], %s2399_s29 }
 0x3cf   : > { %1806 = vmatpush.msk.msrb.mxu1 %vm1165_vm3, %v1804_v59 }
 0x3d0   : > { %v1056_v2 = vrot.slane %v1055_v62, 4  ;;  %v1067_v3 = vrot.slane %v1066_v63, 4 }
 0x3d1   : > { %v1218_v8 = vpop.f32.mrf.mxu3  ;;  %1320 = vmatpush.msrb.mxu1 %v1803_v60 }
 0x3d2   : > { %v1057_v4 = vmax.f32 %v1055_v62, %v1056_v2  ;;  %v1068_v5 = vmax.f32 %v1066_v63, %v1067_v3  ;;  %v1219_v18 = vadd.f32 %v1913_v14, %v1218_v8 }
 0x3d4   : > { %v1058_v6 = vrot.slane %v1057_v4, 2  ;;  %v1069_v10 = vrot.slane %v1068_v5, 2  ;;  %v1224_v19 = vmax.f32 %v1219_v18, 0.0 }
 0x3d6   : > { %v1059_v11 = vmax.f32 %v1057_v4, %v1058_v6  ;;  %v1070_v7 = vmax.f32 %v1068_v5, %v1069_v10  ;;  %v1140_v29 = vpop.f32.mrf.mxu2 }
 0x3d8   : > { %v1060_v12 = vrot.slane %v1059_v11, 1  ;;  %v1071_v13 = vrot.slane %v1070_v7, 1 }
 0x3d9   : > { %v1221_v20 = vpop.f32.mrf.mxu3 }
 0x3da   : > { %v1061_v15 = vmax.f32 %v1059_v11, %v1060_v12  ;;  %v1072_v16 = vmax.f32 %v1070_v7, %v1071_v13  ;;  %v1222_v21 = vadd.f32 %v1913_v14, %v1221_v20  ;;  %v1812_v11 = vld [vmem:[%s2657_s17 + $0x18] sm:$0x3]  ;;  %v1811_v7 = vld [vmem:[%s2657_s17 + $0x10] sm:$0xff] }
 0x3db   : > { %v1916_v13 = vld [vmem:[%s2539_s4 + $0x2] ss:$0 sm:$0xff] }
 0x3dc   : > { %v1073_v17 = vsel %vm1049_vm13, %v1061_v15, %v1072_v16  ;;  %v1225_v22 = vmax.f32 %v1222_v21, 0.0 }
 0x3dd   : > { %1787 = vmatmul.msk.f32.vlgmr.msrb.gmra.mxu0 %vm796_vm1, %v1073_v17  ;;  %vm1385_vm1 = vcmp.eq.s32.totalorder %v2623_v9, 1 }
 0x3de   : > { %v1387_v32 = vsel %vm1385_vm1, %v2504_v48, -1e+30  ;;  %v1372_v48 = vmax.f32 %v1370_v34, %v1371_v36  ;;  %1813 = vmatpush.msk.msrb.mxu0 %vm1165_vm3, %v1812_v11  ;;  %v1917_v36 = vld [vmem:[%s656_s14] ss:$0 sm:$0xff] }
 0x3df   : > { %v1389_v38 = vsel %vm1158_vm4, %v1387_v32, -inf }
 0x3e0   : > { %v1391_v39 = vmax.f32 %v1389_v38, %v1390_v37  ;;  %v1373_v41 = vrot.slane %v1372_v48, 4  ;;  %1448 = vmatpush.msrb.mxu0 %v1811_v7 }
 0x3e2   : > { %v1392_v42 = vrot.slane %v1391_v39, 4  ;;  %v1374_v43 = vmax.f32 %v1372_v48, %v1373_v41 }
 0x3e4   : > { %v1393_v44 = vmax.f32 %v1391_v39, %v1392_v42  ;;  %v1375_v47 = vrot.slane %v1374_v43, 2 }
 0x3e5   : > { %1799 = vmatmul.msk.f32.vlgmr.msra.gmra.mxu0 %vm1158_vm4, %v1224_v19 }
 0x3e6   : > { %v1394_v50 = vrot.slane %v1393_v44, 2  ;;  %v1376_v52 = vmax.f32 %v1374_v43, %v1375_v47 }
 0x3e8   : > { %v1395_v53 = vmax.f32 %v1393_v44, %v1394_v50  ;;  %v1377_v54 = vrot.slane %v1376_v52, 1 }
 0x3ea   : > { %v1396_v55 = vrot.slane %v1395_v53, 1  ;;  %v1378_v56 = vmax.f32 %v1376_v52, %v1377_v54 }
 0x3ec   : > { %v1397_v57 = vmax.f32 %v1395_v53, %v1396_v55 }
 0x3ed   : > { %1800 = vmatmul.msk.f32.gmra.mxu0 %vm1158_vm4, %v1225_v22 }
 0x3ee   : > { %v1398_v58 = vsel %vm1049_vm13, %v1378_v56, %v1397_v57 }
 0x45a   : > { %v1114_v30 = vpop.f32.mrf.mxu0 }
 0x45b   : > { %v1141_v33 = vadd.f32 %v1140_v29, %v1114_v30 }
 0x45d   : > { %v1147_v35 = vadd.f32 %v1914_v26, %v1141_v33 }
 0x45f   : > { %v1148_v49 = vmax.f32 %v1147_v35, 0.0 }
 0x461   : > { %1150 = vst.msk [vmem:[%s778_s15] sm:$0x3] %vm1149_vm5, %v1148_v49 }
 0x462   : > { %v1257_v40 = vpop.f32.mrf.mxu0 }
 0x46a   : > { %v1260_v45 = vpop.f32.mrf.mxu0 }
 0x46b   : > { %1280 = vmatpush.msra.mxu2 %v1260_v45 }
 0x46d   : > { %1281 = vmatpush.msra.mxu2 %v1257_v40 }
 0x46e   : > { %1801 = vmatmul.msk.f32.vlgmr.msra.gmra.mxu2 %vm833_vm2, %v2529_v0 }
 0x46f   : > { %1815 = vmatpush.msk.msrb.mxu2 %vm1165_vm3, %v1423_v46 }
 0x471   : > { %1474 = vmatpush.msrb.mxu2 %v1422_v51 }
 0x476   : > { %1802 = vmatmul.msk.f32.gmra.mxu2 %vm833_vm2, %v2533_v1 }
 0x47e   : > { %1816 = vmatmul.msk.f32.vlgmr.msrb.gmra.mxu2 %vm1158_vm4, %v1398_v58 }
 0x4f1   : > { %v1283_v62 = vpop.f32.mrf.mxu2 }
 0x4f2   : > { %v1284_v63 = vadd.f32 %v1915_v61, %v1283_v62 }
 0x4f4   : > { %v1289_v2 = vmax.f32 %v1284_v63, 0.0 }
 0x4f6   : > { %1807 = vmatmul.msk.f32.vlgmr.msrb.gmra.mxu1 %vm1158_vm4, %v1289_v2 }
 0x4f9   : > { %v1286_v3 = vpop.f32.mrf.mxu2 }
 0x4fa   : > { %v1287_v4 = vadd.f32 %v1915_v61, %v1286_v3 }
 0x4fc   : > { %v1290_v5 = vmax.f32 %v1287_v4, 0.0 }
 0x4fe   : > { %1808 = vmatmul.msk.f32.gmra.mxu1 %vm1158_vm4, %v1290_v5 }
 0x501   : > { %v1476_v37 = vpop.f32.mrf.mxu2 }
 0x573   : > { %v1322_v6 = vpop.f32.mrf.mxu1 }
 0x57b   : > { %v1325_v10 = vpop.f32.mrf.mxu1 }
 0x57c   : > { %1345 = vmatpush.msrb.mxu3 %v1325_v10 }
 0x57e   : > { %1346 = vmatpush.msrb.mxu3 %v1322_v6 }
 0x57f   : > { %1809 = vmatmul.msk.f32.vlgmr.msrb.gmra.mxu3 %vm833_vm2, %v2529_v0 }
 0x587   : > { %1810 = vmatmul.msk.f32.gmra.mxu3 %vm833_vm2, %v2533_v1  ;;  %vm1485_vm2 = vcmask 123904  }
 0x602   : > { %v1348_v12 = vpop.f32.mrf.mxu3 }
 0x603   : > { %v1349_v8 = vadd.f32 %v1916_v13, %v1348_v12 }
 0x605   : > { %v1399_v15 = vsel %vm1366_vm14, %v1349_v8, -1e+30  ;;  %v1410_v16 = vsel %vm1385_vm1, %v1349_v8, -1e+30 }
 0x606   : > { %v1401_v18 = vsel %vm1158_vm4, %v1399_v15, -inf  ;;  %v1412_v19 = vsel %vm1158_vm4, %v1410_v16, -inf }
 0x60a   : > { %v1351_v14 = vpop.f32.mrf.mxu3 }
 0x60b   : > { %v1352_v0 = vadd.f32 %v1916_v13, %v1351_v14 }
 0x60d   : > { %v1400_v1 = vsel %vm1367_vm15, %v1352_v0, -1e+30  ;;  %v1411_v17 = vsel %vm1386_vm0, %v1352_v0, -1e+30 }
 0x60e   : > { %v1402_v20 = vsel %vm1158_vm4, %v1400_v1, -inf  ;;  %v1413_v21 = vsel %vm1158_vm4, %v1411_v17, -inf }
 0x60f   : > { %v1403_v22 = vmax.f32 %v1401_v18, %v1402_v20  ;;  %v1414_v23 = vmax.f32 %v1412_v19, %v1413_v21 }
 0x611   : > { %v1404_v9 = vrot.slane %v1403_v22, 4  ;;  %v1415_v26 = vrot.slane %v1414_v23, 4 }
 0x613   : > { %v1405_v27 = vmax.f32 %v1403_v22, %v1404_v9  ;;  %v1416_v28 = vmax.f32 %v1414_v23, %v1415_v26 }
 0x615   : > { %v1406_v24 = vrot.slane %v1405_v27, 2  ;;  %v1417_v29 = vrot.slane %v1416_v28, 2 }
 0x617   : > { %v1407_v25 = vmax.f32 %v1405_v27, %v1406_v24  ;;  %v1418_v30 = vmax.f32 %v1416_v28, %v1417_v29 }
 0x619   : > { %v1408_v31 = vrot.slane %v1407_v25, 1  ;;  %v1419_v32 = vrot.slane %v1418_v30, 1 }
 0x61b   : > { %v1409_v33 = vmax.f32 %v1407_v25, %v1408_v31  ;;  %v1420_v34 = vmax.f32 %v1418_v30, %v1419_v32 }
 0x61d   : > { %v1421_v35 = vsel %vm1049_vm13, %v1409_v33, %v1420_v34 }
 0x61e   : > { %1814 = vmatmul.msk.f32.vlgmr.msrb.gmra.mxu0 %vm1158_vm4, %v1421_v35 }
 0x69b   : > { %v1450_v38 = vpop.f32.mrf.mxu0 }
 0x69c   : > { %v1477_v49 = vadd.f32 %v1476_v37, %v1450_v38 }
 0x69e   : > { %v1483_v48 = vadd.f32 %v1917_v36, %v1477_v49 }
 0x6a0   : > { %v1484_v39 = vmax.f32 %v1483_v48, 0.0 }
 0x6a2   : > { %1486 = vst.msk [vmem:[%s782_s18] sm:$0x3] %vm1485_vm2, %v1484_v39 }
 0x6a3 PF: > { %s2767_s21 = sld [smem:[#allocation14_spill]]  ;;  %s2770_s18 = smov %s2132_s19 }
 0x6a4   : > { %s2768_s1 = sld [smem:[#allocation13_spill]] }
 0x6a5   : > { %s2769_s20 = sld [smem:[#allocation15_spill]] }
 0x6a9   : > { %p27_p7 = scmp.ge.s32.totalorder %s2767_s21, 7  }
 0x6aa   : > { %s2771_s19 = smov %s2768_s1 }
 0x6ab   :  { %29 = sbr.rel (!%p27_p7) target bundleno = 13 (0xd), region = 201 }
 0x6b0   :  { %1520 = vsyncpa [#allocation3], 1 }
 0x6b1   :  { %1522 = vsyncpa [#allocation3 + $0x1], 1 }
 0x6b2   :  { %1523 = vsyncpa [#allocation5], 1 }

</bundles_post_ra>
